<compile_context>
chip_gen: v7x
topology: tpu7x:2x2x1
jax: 0.10.0
libtpu: 0.0.40
codegen_flags: <defaults>
</compile_context>

<pallas_src>
import numpy as np
import jax
import jax.numpy as jnp
from jax.experimental import pallas as pl
from jax.experimental.pallas import tpu as pltpu

# ---------------- small deterministic config ----------------
BS, CIN, IMG = 2, 3, 64
NC = 3                        # number of classes
NA = 3                        # anchors per level
NO = NC + 5                   # outputs per anchor (x,y,w,h,obj,cls...)
NL = 2                        # number of detection levels
STRIDES = (8, 16)
ANCHORS_PX = np.array([[[10, 13], [16, 30], [33, 23]],
                       [[30, 61], [62, 45], [59, 119]]], np.float32)
ANCHORS = ANCHORS_PX / np.array(STRIDES, np.float32).reshape(NL, 1, 1)  # grid units

FL_GAMMA = 0.0                # TODO(synk): FocalLoss path unused (fl_gamma == 0.0 default)
GIOU_W, OBJ_W, CLS_W = 0.05, 1.0, 0.58
ANCHOR_T = 4.0
GR = 1.0
CP, CN = 1.0, 0.0             # smooth_BCE(eps=0.0)

LANES = 128                   # = NL * MAX_NT (levels lane-stacked into one vreg)
MAX_NT = LANES // NL          # per-level matched-target capacity (after rect4 replication)
M_LVL = tuple(BS * (IMG // s) * (IMG // s) for s in STRIDES)       # (128, 32) cells/level
FEAT_LANES = 256              # sum(M_LVL)=160 padded up to a multiple of 128
FEAT_SUBL = 8                 # CIN padded to a full sublane tile

# packed per-target buffer row layout (every row is a lane-dense (1, 128) slab)
R_WT = 0                      # 24 rows : head weight w[o, c], gathered per target anchor
R_BT = R_WT + NO * CIN        # 8 rows  : head bias b[o], gathered per target anchor
R_TB = R_BT + NO              # 4 rows  : target box (tx, ty, tw, th)
R_AN = R_TB + 4               # 2 rows  : matched anchor (aw, ah)
R_TC = R_AN + 2               # NC rows : class targets (cp / cn)
R_WBOX = R_TC + NC            # 1 row   : valid / max(nb_l, 1)
R_WCLS = R_WBOX + 1           # 1 row   : valid / max(nb_l * NC, 1)
R_WCORR = R_WCLS + 1          # 1 row   : keep(last write) / (M_l * NA)
R_VALID = R_WCORR + 1         # 1 row   : valid-target mask
R_PAD = ((R_VALID + 1 + 7) // 8) * 8     # pad rows to a sublane multiple -> 48


# ---------------- in-kernel helpers ----------------
def _bce0(x):
    # BCE-with-logits against target 0 == softplus(x), stable form (log1p per review).
    return jnp.maximum(x, 0.0) + jnp.log1p(jnp.exp(-jnp.abs(x)))


def _bce(x, z):
    # stable binary_cross_entropy_with_logits, pos_weight == 1
    return _bce0(x) - x * z


def _sum_all(x):
    # full reduction kept as a (1, 1) value (lane reduce then sublane reduce)
    return jnp.sum(jnp.sum(x, axis=1, keepdims=True), axis=0, keepdims=True)


# ---------------- fused Detect-head + loss kernel ----------------
def _fused_loss_kernel(objp_ref, feats_ref, gat_ref, tgt_ref, out_ref):
    row = lambda r: tgt_ref[r:r + 1, :]                      # lane-dense (1, 128) load

    # ---- exact matched-cell feature gather via block-one-hot matmul on the MXU ----
    feats = feats_ref[...]                                   # (8, FEAT_LANES)
    ftg = jnp.dot(feats, gat_ref[...],
                  preferred_element_type=jnp.float32)        # (8, LANES) lane-stacked levels

    # ---- sparse head: ps_o = b_o + sum_c w_{o,c} * f_c, weights pre-gathered per anchor ----
    ps = []
    for o in range(NO):
        acc = row(R_BT + o)
        for c in range(CIN):
            acc = acc + row(R_WT + o * CIN + c) * ftg[c:c + 1, :]
        ps.append(acc)                                       # (1, LANES)

    valid = row(R_VALID)

    # ---- GIoU box loss over one full 128-lane vreg (both levels at once) ----
    px = jax.nn.sigmoid(ps[0]) * 2.0 - 0.5
    py = jax.nn.sigmoid(ps[1]) * 2.0 - 0.5
    pw = (jax.nn.sigmoid(ps[2]) * 2.0) ** 2 * row(R_AN)
    ph = (jax.nn.sigmoid(ps[3]) * 2.0) ** 2 * row(R_AN + 1)
    tx, ty, tw, th = row(R_TB), row(R_TB + 1), row(R_TB + 2), row(R_TB + 3)
    b1_x1, b1_x2 = px - pw * 0.5, px + pw * 0.5
    b1_y1, b1_y2 = py - ph * 0.5, py + ph * 0.5
    b2_x1, b2_x2 = tx - tw * 0.5, tx + tw * 0.5
    b2_y1, b2_y2 = ty - th * 0.5, ty + th * 0.5
    inter = (jnp.maximum(jnp.minimum(b1_x2, b2_x2) - jnp.maximum(b1_x1, b2_x1), 0.0) *
             jnp.maximum(jnp.minimum(b1_y2, b2_y2) - jnp.maximum(b1_y1, b2_y1), 0.0))
    w1, h1 = b1_x2 - b1_x1, b1_y2 - b1_y1
    w2, h2 = b2_x2 - b2_x1, b2_y2 - b2_y1
    union = w1 * h1 + 1e-16 + w2 * h2 - inter
    iou = inter / union
    cw = jnp.maximum(b1_x2, b2_x2) - jnp.minimum(b1_x1, b2_x1)
    ch = jnp.maximum(b1_y2, b2_y2) - jnp.minimum(b1_y1, b2_y1)
    c_area = cw * ch + 1e-16
    giou = iou - (c_area - union) / c_area                   # (1, LANES)
    giou = jnp.where(valid > 0.0, giou, 0.0)                 # keep padded lanes inert
    lbox = _sum_all((1.0 - giou) * row(R_WBOX))              # per-level mean pre-baked in weights

    # ---- classification BCE (matched targets only) ----
    bcls = (_bce(ps[5], row(R_TC)) +
            _bce(ps[6], row(R_TC + 1)) +
            _bce(ps[7], row(R_TC + 2)))
    lcls = _sum_all(bcls * row(R_WCLS))

    # ---- objectness BCE, exact decomposition: sum BCE(x,0) - sum x*tobj ----
    tval = (1.0 - GR) + GR * jnp.maximum(giou, 0.0)          # tobj value at matched cell
    corr = _sum_all(ps[4] * tval * row(R_WCORR))             # de-duped (last-write) cells only
    lobj = -corr

    # dense obj logits, anchors stacked on sublanes, obj-head scalars read from SMEM
    sub3 = jax.lax.broadcasted_iota(jnp.int32, (NA, 1), 0)

    def _col(l, k):                                          # (NA, 1) per-anchor scalar column
        return jnp.where(sub3 == 0, objp_ref[l * NA * 4 + 0 * 4 + k],
               jnp.where(sub3 == 1, objp_ref[l * NA * 4 + 1 * 4 + k],
                                    objp_ref[l * NA * 4 + 2 * 4 + k]))

    off = 0
    for l in range(NL):                                      # static 2x unroll over levels
        m = M_LVL[l]
        fl = feats[0:CIN, off:off + m]                       # (CIN, m) dense features
        logit = (_col(l, 3) + _col(l, 0) * fl[0:1, :] +
                 _col(l, 1) * fl[1:2, :] + _col(l, 2) * fl[2:3, :])   # (NA, m)
        lobj = lobj + _sum_all(_bce0(logit)) * (1.0 / float(NA * m))  # BCE against tobj == 0
        off += m

    lbox = lbox * GIOU_W
    lobj = lobj * OBJ_W
    lcls = lcls * CLS_W
    lane = jax.lax.broadcasted_iota(jnp.int32, (1, LANES), 1)
    out_ref[...] = (jnp.where(lane == 0, lbox, 0.0) +
                    jnp.where(lane == 1, lobj, 0.0) +
                    jnp.where(lane == 2, lcls, 0.0))


def _fused_loss_call(obj_params, feats, gather_mat, tgt_packed):
    # grid-free single invocation; all operands whole-array resident.
    # Note (v7x): single-TensorCore is acceptable for this overhead-dominated micro-kernel.
    return pl.pallas_call(
        _fused_loss_kernel,
        out_shape=jax.ShapeDtypeStruct((1, LANES), jnp.float32),
        in_specs=[
            pl.BlockSpec(memory_space=pltpu.MemorySpace.SMEM),   # (24,) obj-head scalars
            pl.BlockSpec(memory_space=pltpu.MemorySpace.VMEM),   # (8, 256) packed dense features
            pl.BlockSpec(memory_space=pltpu.MemorySpace.VMEM),   # (256, 128) gather one-hot
            pl.BlockSpec(memory_space=pltpu.MemorySpace.VMEM),   # (48, 128) packed targets
        ],
        out_specs=pl.BlockSpec(memory_space=pltpu.MemorySpace.VMEM),
    )(obj_params, feats, gather_mat, tgt_packed)


# ---------------- jitted forward (backbone stand-in + fused kernel) ----------------
@jax.jit
def forward_loss(image, obj_params, gather_mat, tgt_packed):
    bs = image.shape[0]
    f_list = []
    for s in STRIDES:
        ny = nx = IMG // s
        # TODO(synk): real YOLOv5 backbone; deterministic average-pool stand-in.
        f = image.reshape(bs, CIN, ny, s, nx, s).mean(axis=(3, 5))       # (bs, CIN, ny, nx)
        f = jnp.transpose(f, (1, 0, 2, 3)).reshape(CIN, bs * ny * nx)    # lane-dense (CIN, M_l)
        f_list.append(f)
    feats = jnp.concatenate(f_list, axis=1)                              # (CIN, 160)
    feats = jnp.pad(feats, ((0, FEAT_SUBL - CIN), (0, FEAT_LANES - sum(M_LVL))))  # (8, 256)
    out = _fused_loss_call(obj_params, feats, gather_mat, tgt_packed)
    return {'loss_box': out[0, 0:1], 'loss_obj': out[0, 1:2], 'loss_cls': out[0, 2:3]}


# ---------------- build_targets (host; data-dependent shapes) ----------------
def build_targets_np(p_shapes, targets):
    na, nt = NA, targets.shape[0]
    tcls, tbox, indices, anch = [], [], [], []
    gain = np.ones(6, np.float32)
    off = np.array([[1, 0], [0, 1], [-1, 0], [0, -1]], np.float32)
    at = np.tile(np.arange(na).reshape(na, 1), (1, nt))
    g = 0.5  # style == 'rect4'
    for i in range(NL):
        anchors = ANCHORS[i]
        shp = p_shapes[i]  # (bs, na, ny, nx, no)
        gain[2:] = np.array([shp[3], shp[2], shp[3], shp[2]], np.float32)
        t = targets * gain
        offsets = 0.0
        a = np.zeros((0,), np.int64)
        if nt:
            r = t[None, :, 4:6] / anchors[:, None]
            j = np.maximum(r, 1.0 / r).max(2) < ANCHOR_T
            a, t = at[j], np.tile(t, (na, 1, 1))[j]
            gxy = t[:, 2:4]
            z = np.zeros_like(gxy)
            jj, kk = ((gxy % 1.0 < g) & (gxy > 1.0)).T
            ll, mm = ((gxy % 1.0 > 1 - g) & (gxy < gain[[2, 3]] - 1.0)).T
            a = np.concatenate((a, a[jj], a[kk], a[ll], a[mm]), 0)
            t = np.concatenate((t, t[jj], t[kk], t[ll], t[mm]), 0)
            offsets = np.concatenate((z, z[jj] + off[0], z[kk] + off[1],
                                      z[ll] + off[2], z[mm] + off[3]), 0) * g
        b = t[:, 0].astype(np.int64)
        c = t[:, 1].astype(np.int64)
        gxy = t[:, 2:4]
        gwh = t[:, 4:6]
        gij = (gxy - offsets).astype(np.int64)
        gi, gj = gij[:, 0], gij[:, 1]
        indices.append((b, a, gj, gi))
        tbox.append(np.concatenate((gxy - gij, gwh), 1).astype(np.float32))
        anch.append(anchors[a].astype(np.float32))
        tcls.append(c)
    return tcls, tbox, indices, anch


def prepare_packed_inputs(tcls, tbox, indices, anch, p_shapes, head_w, head_b):
    """Pack host-built targets + anchor-gathered head params into fixed-size buffers."""
    gat = np.zeros((FEAT_LANES, LANES), np.float32)     # block one-hot gather matrix
    tgt = np.zeros((R_PAD, LANES), np.float32)          # packed per-target buffer
    objp = np.zeros((NL * NA * 4,), np.float32)         # obj-head scalars for SMEM
    lvl_off = [0]
    for m in M_LVL[:-1]:
        lvl_off.append(lvl_off[-1] + m)

    for i in range(NL):
        W = np.asarray(head_w[i], np.float32)           # (CIN, NA*NO)
        Bv = np.asarray(head_b[i], np.float32)          # (NA*NO,)
        for ai in range(NA):
            base = i * NA * 4 + ai * 4
            objp[base:base + CIN] = W[:, ai * NO + 4]
            objp[base + 3] = Bv[ai * NO + 4]

        b, aa, gj, gi = [np.asarray(x, np.int64) for x in indices[i]]
        nb = int(b.shape[0])
        assert nb <= MAX_NT, f"level {i}: {nb} matched targets exceed MAX_NT={MAX_NT}"
        if nb == 0:
            continue
        _, _, ny, nx, _ = p_shapes[i]
        m_l = BS * ny * nx
        cols = i * MAX_NT + np.arange(nb)
        flat = ((b * ny + gj) * nx + gi).astype(np.int64)
        gat[lvl_off[i] + flat, cols] = 1.0              # exact matched-cell gather

        for o in range(NO):                             # anchor-gathered head params
            for c in range(CIN):
                tgt[R_WT + o * CIN + c, cols] = W[c, aa * NO + o]
            tgt[R_BT + o, cols] = Bv[aa * NO + o]
        tgt[R_TB:R_TB + 4, cols] = np.asarray(tbox[i], np.float32).T
        tgt[R_AN:R_AN + 2, cols] = np.asarray(anch[i], np.float32).T
        tgt[R_TC + np.asarray(tcls[i], np.int64), cols] = CP     # background stays CN == 0
        tgt[R_WBOX, cols] = 1.0 / max(nb, 1)
        tgt[R_WCLS, cols] = 1.0 / max(nb * NC, 1)
        tgt[R_VALID, cols] = 1.0
        # "last write wins" de-dup of (b, a, gj, gi) cells for the tobj correction,
        # matching PyTorch index-assignment semantics.
        key = ((b * NA + aa) * ny + gj) * nx + gi
        last = {}
        for t in range(nb):
            last[int(key[t])] = t
        keep = np.fromiter(last.values(), dtype=np.int64)
        tgt[R_WCORR, i * MAX_NT + keep] = 1.0 / float(m_l * NA)
    return objp, gat, tgt


# ---------------- pure NumPy reference (mirrors the PyTorch module) ----------------
def reference_loss_np(image_np, head_w, head_b, tcls, tbox, indices, anch):
    image_np = np.asarray(image_np, np.float64)
    p = []
    for i, s in enumerate(STRIDES):
        ny = nx = IMG // s
        feat = image_np.reshape(BS, CIN, ny, s, nx, s).mean(axis=(3, 5))
        feat = feat.transpose(0, 2, 3, 1).reshape(BS * ny * nx, CIN)
        out = feat @ np.asarray(head_w[i], np.float64) + np.asarray(head_b[i], np.float64)
        p.append(out.reshape(BS, ny, nx, NA, NO).transpose(0, 3, 1, 2, 4))

    def sigmoid(x):
        return 1.0 / (1.0 + np.exp(-x))

    def bce_mean(x, z):
        return np.mean(np.maximum(x, 0.0) - x * z + np.log1p(np.exp(-np.abs(x))))

    lcls = lbox = lobj = 0.0
    for i, pi in enumerate(p):
        b, a, gj, gi = indices[i]
        tobj = np.zeros(pi.shape[:4])
        nb = b.shape[0]
        if nb:
            ps = pi[b, a, gj, gi]
            pxy = sigmoid(ps[:, :2]) * 2.0 - 0.5
            pwh = (sigmoid(ps[:, 2:4]) * 2.0) ** 2 * anch[i]
            px, py, pw, ph = pxy[:, 0], pxy[:, 1], pwh[:, 0], pwh[:, 1]
            tx, ty, tw, th = tbox[i][:, 0], tbox[i][:, 1], tbox[i][:, 2], tbox[i][:, 3]
            b1x1, b1x2 = px - pw / 2, px + pw / 2
            b1y1, b1y2 = py - ph / 2, py + ph / 2
            b2x1, b2x2 = tx - tw / 2, tx + tw / 2
            b2y1, b2y2 = ty - th / 2, ty + th / 2
            inter = (np.clip(np.minimum(b1x2, b2x2) - np.maximum(b1x1, b2x1), 0, None) *
                     np.clip(np.minimum(b1y2, b2y2) - np.maximum(b1y1, b2y1), 0, None))
            union = (b1x2 - b1x1) * (b1y2 - b1y1) + 1e-16 + (b2x2 - b2x1) * (b2y2 - b2y1) - inter
            iou = inter / union
            cw = np.maximum(b1x2, b2x2) - np.minimum(b1x1, b2x1)
            ch = np.maximum(b1y2, b2y2) - np.minimum(b1y1, b2y1)
            c_area = cw * ch + 1e-16
            giou = iou - (c_area - union) / c_area
            lbox += np.mean(1.0 - giou)
            tobj[b, a, gj, gi] = (1.0 - GR) + GR * np.clip(giou, 0.0, None)
            tcl = np.full((nb, NC), CN)
            tcl[np.arange(nb), np.asarray(tcls[i], np.int64)] = CP
            lcls += bce_mean(ps[:, 5:], tcl)
        lobj += bce_mean(pi[..., 4], tobj)
    return {'loss_box': lbox * GIOU_W, 'loss_obj': lobj * OBJ_W, 'loss_cls': lcls * CLS_W}


# ---------------- main ----------------
if __name__ == "__main__":
    key = jax.random.PRNGKey(0)
    k_img, k_w0, k_b0, k_w1, k_b1 = jax.random.split(key, 5)

    image = jax.random.normal(k_img, (BS, CIN, IMG, IMG), jnp.float32)
    # targets: (nt, 6) = [image_idx, class, x, y, w, h] (normalized)
    targets = np.array([[0, 0, 0.30, 0.40, 0.25, 0.30],
                        [0, 1, 0.70, 0.60, 0.20, 0.25],
                        [1, 2, 0.45, 0.55, 0.35, 0.30],
                        [1, 0, 0.60, 0.35, 0.15, 0.20]], np.float32)

    head_w = [(np.asarray(jax.random.normal(k_w0, (CIN, NA * NO), jnp.float32)) * 0.1
               ).astype(np.float32),
              (np.asarray(jax.random.normal(k_w1, (CIN, NA * NO), jnp.float32)) * 0.1
               ).astype(np.float32)]
    head_b = [(np.asarray(jax.random.normal(k_b0, (NA * NO,), jnp.float32)) * 0.1
               ).astype(np.float32),
              (np.asarray(jax.random.normal(k_b1, (NA * NO,), jnp.float32)) * 0.1
               ).astype(np.float32)]

    data = {'image': image, 'label': targets}

    # host-side target assignment (data-dependent shapes), packed to fixed-size buffers
    p_shapes = [(BS, NA, IMG // s, IMG // s, NO) for s in STRIDES]
    tcls, tbox, indices, anch = build_targets_np(p_shapes, data['label'])
    objp, gat, tgt = prepare_packed_inputs(tcls, tbox, indices, anch, p_shapes, head_w, head_b)

    losses = forward_loss(data['image'], jnp.asarray(objp), jnp.asarray(gat), jnp.asarray(tgt))
    losses = {k: jax.block_until_ready(v) for k, v in losses.items()}

    # validate against a pure NumPy mirror of the PyTorch compute_loss
    ref = reference_loss_np(np.asarray(data['image']), head_w, head_b,
                            tcls, tbox, indices, anch)
    for name in ('loss_box', 'loss_obj', 'loss_cls'):
        v = np.asarray(losses[name])
        assert v.shape == (1,) and np.isfinite(v).all(), (name, v)
        r = float(ref[name])
        assert abs(float(v[0]) - r) <= 2e-3 + 2e-2 * abs(r), (name, float(v[0]), r)

    print("KERNEL_OK")
</pallas_src>

<mosaic_0001>
module attributes {stable_mosaic.version = 11 : i64} {
  func.func @_fused_loss_kernel(%arg0: memref<24xf32, #tpu.memory_space<smem>>, %arg1: memref<8x256xf32, #tpu.memory_space<vmem>>, %arg2: memref<256x128xf32, #tpu.memory_space<vmem>>, %arg3: memref<48x128xf32, #tpu.memory_space<vmem>>, %arg4: memref<1x128xf32, #tpu.memory_space<vmem>>) attributes {dimension_semantics = [], scalar_prefetch = 0 : i64, scratch_operands = 0 : i64, tpu.core_type = #tpu.core_type<tc>} {
    %c0 = arith.constant 0 : index
    %c0_0 = arith.constant 0 : index
    %0 = vector.load %arg1[%c0, %c0_0] : memref<8x256xf32, #tpu.memory_space<vmem>>, vector<8x256xf32>
    %c0_1 = arith.constant 0 : index
    %c0_2 = arith.constant 0 : index
    %1 = vector.load %arg2[%c0_1, %c0_2] : memref<256x128xf32, #tpu.memory_space<vmem>>, vector<256x128xf32>
    %cst = arith.constant dense<0.000000e+00> : vector<8x128xf32>
    %2 = tpu.matmul %0, %1, %cst {dimension_numbers = #tpu.dot_dimension_numbers<[1], [0], [0], [1], [0, 0, 1, 1], [], []>} : vector<8x256xf32>, vector<256x128xf32>, vector<8x128xf32> -> vector<8x128xf32>
    %c24 = arith.constant 24 : index
    %c0_3 = arith.constant 0 : index
    %3 = vector.load %arg3[%c24, %c0_3] : memref<48x128xf32, #tpu.memory_space<vmem>>, vector<1x128xf32>
    %c0_4 = arith.constant 0 : index
    %c0_5 = arith.constant 0 : index
    %4 = vector.load %arg3[%c0_4, %c0_5] : memref<48x128xf32, #tpu.memory_space<vmem>>, vector<1x128xf32>
    %5 = vector.extract_strided_slice %2 {offsets = [0, 0], sizes = [1, 128], strides = [1, 1]} : vector<8x128xf32> to vector<1x128xf32>
    %6 = arith.mulf %4, %5 : vector<1x128xf32>
    %7 = arith.addf %3, %6 : vector<1x128xf32>
    %c1 = arith.constant 1 : index
    %c0_6 = arith.constant 0 : index
    %8 = vector.load %arg3[%c1, %c0_6] : memref<48x128xf32, #tpu.memory_space<vmem>>, vector<1x128xf32>
    %9 = vector.extract_strided_slice %2 {offsets = [1, 0], sizes = [1, 128], strides = [1, 1]} : vector<8x128xf32> to vector<1x128xf32>
    %10 = arith.mulf %8, %9 : vector<1x128xf32>
    %11 = arith.addf %7, %10 : vector<1x128xf32>
    %c2 = arith.constant 2 : index
    %c0_7 = arith.constant 0 : index
    %12 = vector.load %arg3[%c2, %c0_7] : memref<48x128xf32, #tpu.memory_space<vmem>>, vector<1x128xf32>
    %13 = vector.extract_strided_slice %2 {offsets = [2, 0], sizes = [1, 128], strides = [1, 1]} : vector<8x128xf32> to vector<1x128xf32>
    %14 = arith.mulf %12, %13 : vector<1x128xf32>
    %15 = arith.addf %11, %14 : vector<1x128xf32>
    %c25 = arith.constant 25 : index
    %c0_8 = arith.constant 0 : index
    %16 = vector.load %arg3[%c25, %c0_8] : memref<48x128xf32, #tpu.memory_space<vmem>>, vector<1x128xf32>
    %c3 = arith.constant 3 : index
    %c0_9 = arith.constant 0 : index
    %17 = vector.load %arg3[%c3, %c0_9] : memref<48x128xf32, #tpu.memory_space<vmem>>, vector<1x128xf32>
    %18 = vector.extract_strided_slice %2 {offsets = [0, 0], sizes = [1, 128], strides = [1, 1]} : vector<8x128xf32> to vector<1x128xf32>
    %19 = arith.mulf %17, %18 : vector<1x128xf32>
    %20 = arith.addf %16, %19 : vector<1x128xf32>
    %c4 = arith.constant 4 : index
    %c0_10 = arith.constant 0 : index
    %21 = vector.load %arg3[%c4, %c0_10] : memref<48x128xf32, #tpu.memory_space<vmem>>, vector<1x128xf32>
    %22 = vector.extract_strided_slice %2 {offsets = [1, 0], sizes = [1, 128], strides = [1, 1]} : vector<8x128xf32> to vector<1x128xf32>
    %23 = arith.mulf %21, %22 : vector<1x128xf32>
    %24 = arith.addf %20, %23 : vector<1x128xf32>
    %c5 = arith.constant 5 : index
    %c0_11 = arith.constant 0 : index
    %25 = vector.load %arg3[%c5, %c0_11] : memref<48x128xf32, #tpu.memory_space<vmem>>, vector<1x128xf32>
    %26 = vector.extract_strided_slice %2 {offsets = [2, 0], sizes = [1, 128], strides = [1, 1]} : vector<8x128xf32> to vector<1x128xf32>
    %27 = arith.mulf %25, %26 : vector<1x128xf32>
    %28 = arith.addf %24, %27 : vector<1x128xf32>
    %c26 = arith.constant 26 : index
    %c0_12 = arith.constant 0 : index
    %29 = vector.load %arg3[%c26, %c0_12] : memref<48x128xf32, #tpu.memory_space<vmem>>, vector<1x128xf32>
    %c6 = arith.constant 6 : index
    %c0_13 = arith.constant 0 : index
    %30 = vector.load %arg3[%c6, %c0_13] : memref<48x128xf32, #tpu.memory_space<vmem>>, vector<1x128xf32>
    %31 = vector.extract_strided_slice %2 {offsets = [0, 0], sizes = [1, 128], strides = [1, 1]} : vector<8x128xf32> to vector<1x128xf32>
    %32 = arith.mulf %30, %31 : vector<1x128xf32>
    %33 = arith.addf %29, %32 : vector<1x128xf32>
    %c7 = arith.constant 7 : index
    %c0_14 = arith.constant 0 : index
    %34 = vector.load %arg3[%c7, %c0_14] : memref<48x128xf32, #tpu.memory_space<vmem>>, vector<1x128xf32>
    %35 = vector.extract_strided_slice %2 {offsets = [1, 0], sizes = [1, 128], strides = [1, 1]} : vector<8x128xf32> to vector<1x128xf32>
    %36 = arith.mulf %34, %35 : vector<1x128xf32>
    %37 = arith.addf %33, %36 : vector<1x128xf32>
    %c8 = arith.constant 8 : index
    %c0_15 = arith.constant 0 : index
    %38 = vector.load %arg3[%c8, %c0_15] : memref<48x128xf32, #tpu.memory_space<vmem>>, vector<1x128xf32>
    %39 = vector.extract_strided_slice %2 {offsets = [2, 0], sizes = [1, 128], strides = [1, 1]} : vector<8x128xf32> to vector<1x128xf32>
    %40 = arith.mulf %38, %39 : vector<1x128xf32>
    %41 = arith.addf %37, %40 : vector<1x128xf32>
    %c27 = arith.constant 27 : index
    %c0_16 = arith.constant 0 : index
    %42 = vector.load %arg3[%c27, %c0_16] : memref<48x128xf32, #tpu.memory_space<vmem>>, vector<1x128xf32>
    %c9 = arith.constant 9 : index
    %c0_17 = arith.constant 0 : index
    %43 = vector.load %arg3[%c9, %c0_17] : memref<48x128xf32, #tpu.memory_space<vmem>>, vector<1x128xf32>
    %44 = vector.extract_strided_slice %2 {offsets = [0, 0], sizes = [1, 128], strides = [1, 1]} : vector<8x128xf32> to vector<1x128xf32>
    %45 = arith.mulf %43, %44 : vector<1x128xf32>
    %46 = arith.addf %42, %45 : vector<1x128xf32>
    %c10 = arith.constant 10 : index
    %c0_18 = arith.constant 0 : index
    %47 = vector.load %arg3[%c10, %c0_18] : memref<48x128xf32, #tpu.memory_space<vmem>>, vector<1x128xf32>
    %48 = vector.extract_strided_slice %2 {offsets = [1, 0], sizes = [1, 128], strides = [1, 1]} : vector<8x128xf32> to vector<1x128xf32>
    %49 = arith.mulf %47, %48 : vector<1x128xf32>
    %50 = arith.addf %46, %49 : vector<1x128xf32>
    %c11 = arith.constant 11 : index
    %c0_19 = arith.constant 0 : index
    %51 = vector.load %arg3[%c11, %c0_19] : memref<48x128xf32, #tpu.memory_space<vmem>>, vector<1x128xf32>
    %52 = vector.extract_strided_slice %2 {offsets = [2, 0], sizes = [1, 128], strides = [1, 1]} : vector<8x128xf32> to vector<1x128xf32>
    %53 = arith.mulf %51, %52 : vector<1x128xf32>
    %54 = arith.addf %50, %53 : vector<1x128xf32>
    %c28 = arith.constant 28 : index
    %c0_20 = arith.constant 0 : index
    %55 = vector.load %arg3[%c28, %c0_20] : memref<48x128xf32, #tpu.memory_space<vmem>>, vector<1x128xf32>
    %c12 = arith.constant 12 : index
    %c0_21 = arith.constant 0 : index
    %56 = vector.load %arg3[%c12, %c0_21] : memref<48x128xf32, #tpu.memory_space<vmem>>, vector<1x128xf32>
    %57 = vector.extract_strided_slice %2 {offsets = [0, 0], sizes = [1, 128], strides = [1, 1]} : vector<8x128xf32> to vector<1x128xf32>
    %58 = arith.mulf %56, %57 : vector<1x128xf32>
    %59 = arith.addf %55, %58 : vector<1x128xf32>
    %c13 = arith.constant 13 : index
    %c0_22 = arith.constant 0 : index
    %60 = vector.load %arg3[%c13, %c0_22] : memref<48x128xf32, #tpu.memory_space<vmem>>, vector<1x128xf32>
    %61 = vector.extract_strided_slice %2 {offsets = [1, 0], sizes = [1, 128], strides = [1, 1]} : vector<8x128xf32> to vector<1x128xf32>
    %62 = arith.mulf %60, %61 : vector<1x128xf32>
    %63 = arith.addf %59, %62 : vector<1x128xf32>
    %c14 = arith.constant 14 : index
    %c0_23 = arith.constant 0 : index
    %64 = vector.load %arg3[%c14, %c0_23] : memref<48x128xf32, #tpu.memory_space<vmem>>, vector<1x128xf32>
    %65 = vector.extract_strided_slice %2 {offsets = [2, 0], sizes = [1, 128], strides = [1, 1]} : vector<8x128xf32> to vector<1x128xf32>
    %66 = arith.mulf %64, %65 : vector<1x128xf32>
    %67 = arith.addf %63, %66 : vector<1x128xf32>
    %c29 = arith.constant 29 : index
    %c0_24 = arith.constant 0 : index
    %68 = vector.load %arg3[%c29, %c0_24] : memref<48x128xf32, #tpu.memory_space<vmem>>, vector<1x128xf32>
    %c15 = arith.constant 15 : index
    %c0_25 = arith.constant 0 : index
    %69 = vector.load %arg3[%c15, %c0_25] : memref<48x128xf32, #tpu.memory_space<vmem>>, vector<1x128xf32>
    %70 = vector.extract_strided_slice %2 {offsets = [0, 0], sizes = [1, 128], strides = [1, 1]} : vector<8x128xf32> to vector<1x128xf32>
    %71 = arith.mulf %69, %70 : vector<1x128xf32>
    %72 = arith.addf %68, %71 : vector<1x128xf32>
    %c16 = arith.constant 16 : index
    %c0_26 = arith.constant 0 : index
    %73 = vector.load %arg3[%c16, %c0_26] : memref<48x128xf32, #tpu.memory_space<vmem>>, vector<1x128xf32>
    %74 = vector.extract_strided_slice %2 {offsets = [1, 0], sizes = [1, 128], strides = [1, 1]} : vector<8x128xf32> to vector<1x128xf32>
    %75 = arith.mulf %73, %74 : vector<1x128xf32>
    %76 = arith.addf %72, %75 : vector<1x128xf32>
    %c17 = arith.constant 17 : index
    %c0_27 = arith.constant 0 : index
    %77 = vector.load %arg3[%c17, %c0_27] : memref<48x128xf32, #tpu.memory_space<vmem>>, vector<1x128xf32>
    %78 = vector.extract_strided_slice %2 {offsets = [2, 0], sizes = [1, 128], strides = [1, 1]} : vector<8x128xf32> to vector<1x128xf32>
    %79 = arith.mulf %77, %78 : vector<1x128xf32>
    %80 = arith.addf %76, %79 : vector<1x128xf32>
    %c30 = arith.constant 30 : index
    %c0_28 = arith.constant 0 : index
    %81 = vector.load %arg3[%c30, %c0_28] : memref<48x128xf32, #tpu.memory_space<vmem>>, vector<1x128xf32>
    %c18 = arith.constant 18 : index
    %c0_29 = arith.constant 0 : index
    %82 = vector.load %arg3[%c18, %c0_29] : memref<48x128xf32, #tpu.memory_space<vmem>>, vector<1x128xf32>
    %83 = vector.extract_strided_slice %2 {offsets = [0, 0], sizes = [1, 128], strides = [1, 1]} : vector<8x128xf32> to vector<1x128xf32>
    %84 = arith.mulf %82, %83 : vector<1x128xf32>
    %85 = arith.addf %81, %84 : vector<1x128xf32>
    %c19 = arith.constant 19 : index
    %c0_30 = arith.constant 0 : index
    %86 = vector.load %arg3[%c19, %c0_30] : memref<48x128xf32, #tpu.memory_space<vmem>>, vector<1x128xf32>
    %87 = vector.extract_strided_slice %2 {offsets = [1, 0], sizes = [1, 128], strides = [1, 1]} : vector<8x128xf32> to vector<1x128xf32>
    %88 = arith.mulf %86, %87 : vector<1x128xf32>
    %89 = arith.addf %85, %88 : vector<1x128xf32>
    %c20 = arith.constant 20 : index
    %c0_31 = arith.constant 0 : index
    %90 = vector.load %arg3[%c20, %c0_31] : memref<48x128xf32, #tpu.memory_space<vmem>>, vector<1x128xf32>
    %91 = vector.extract_strided_slice %2 {offsets = [2, 0], sizes = [1, 128], strides = [1, 1]} : vector<8x128xf32> to vector<1x128xf32>
    %92 = arith.mulf %90, %91 : vector<1x128xf32>
    %93 = arith.addf %89, %92 : vector<1x128xf32>
    %c31 = arith.constant 31 : index
    %c0_32 = arith.constant 0 : index
    %94 = vector.load %arg3[%c31, %c0_32] : memref<48x128xf32, #tpu.memory_space<vmem>>, vector<1x128xf32>
    %c21 = arith.constant 21 : index
    %c0_33 = arith.constant 0 : index
    %95 = vector.load %arg3[%c21, %c0_33] : memref<48x128xf32, #tpu.memory_space<vmem>>, vector<1x128xf32>
    %96 = vector.extract_strided_slice %2 {offsets = [0, 0], sizes = [1, 128], strides = [1, 1]} : vector<8x128xf32> to vector<1x128xf32>
    %97 = arith.mulf %95, %96 : vector<1x128xf32>
    %98 = arith.addf %94, %97 : vector<1x128xf32>
    %c22 = arith.constant 22 : index
    %c0_34 = arith.constant 0 : index
    %99 = vector.load %arg3[%c22, %c0_34] : memref<48x128xf32, #tpu.memory_space<vmem>>, vector<1x128xf32>
    %100 = vector.extract_strided_slice %2 {offsets = [1, 0], sizes = [1, 128], strides = [1, 1]} : vector<8x128xf32> to vector<1x128xf32>
    %101 = arith.mulf %99, %100 : vector<1x128xf32>
    %102 = arith.addf %98, %101 : vector<1x128xf32>
    %c23 = arith.constant 23 : index
    %c0_35 = arith.constant 0 : index
    %103 = vector.load %arg3[%c23, %c0_35] : memref<48x128xf32, #tpu.memory_space<vmem>>, vector<1x128xf32>
    %104 = vector.extract_strided_slice %2 {offsets = [2, 0], sizes = [1, 128], strides = [1, 1]} : vector<8x128xf32> to vector<1x128xf32>
    %105 = arith.mulf %103, %104 : vector<1x128xf32>
    %106 = arith.addf %102, %105 : vector<1x128xf32>
    %c44 = arith.constant 44 : index
    %c0_36 = arith.constant 0 : index
    %107 = vector.load %arg3[%c44, %c0_36] : memref<48x128xf32, #tpu.memory_space<vmem>>, vector<1x128xf32>
    %108 = arith.negf %15 : vector<1x128xf32>
    %109 = math.exp %108 : vector<1x128xf32>
    %cst_37 = arith.constant 1.000000e+00 : f32
    %110 = vector.broadcast %cst_37 : f32 to vector<1x128xf32>
    %111 = arith.addf %110, %109 : vector<1x128xf32>
    %112 = arith.divf %110, %111 : vector<1x128xf32>
    %cst_38 = arith.constant 2.000000e+00 : f32
    %113 = vector.broadcast %cst_38 : f32 to vector<1x128xf32>
    %114 = arith.mulf %112, %113 : vector<1x128xf32>
    %cst_39 = arith.constant 5.000000e-01 : f32
    %115 = vector.broadcast %cst_39 : f32 to vector<1x128xf32>
    %116 = arith.subf %114, %115 : vector<1x128xf32>
    %117 = arith.negf %28 : vector<1x128xf32>
    %118 = math.exp %117 : vector<1x128xf32>
    %cst_40 = arith.constant 1.000000e+00 : f32
    %119 = vector.broadcast %cst_40 : f32 to vector<1x128xf32>
    %120 = arith.addf %119, %118 : vector<1x128xf32>
    %121 = arith.divf %119, %120 : vector<1x128xf32>
    %cst_41 = arith.constant 2.000000e+00 : f32
    %122 = vector.broadcast %cst_41 : f32 to vector<1x128xf32>
    %123 = arith.mulf %121, %122 : vector<1x128xf32>
    %cst_42 = arith.constant 5.000000e-01 : f32
    %124 = vector.broadcast %cst_42 : f32 to vector<1x128xf32>
    %125 = arith.subf %123, %124 : vector<1x128xf32>
    %126 = arith.negf %41 : vector<1x128xf32>
    %127 = math.exp %126 : vector<1x128xf32>
    %cst_43 = arith.constant 1.000000e+00 : f32
    %128 = vector.broadcast %cst_43 : f32 to vector<1x128xf32>
    %129 = arith.addf %128, %127 : vector<1x128xf32>
    %130 = arith.divf %128, %129 : vector<1x128xf32>
    %cst_44 = arith.constant 2.000000e+00 : f32
    %131 = vector.broadcast %cst_44 : f32 to vector<1x128xf32>
    %132 = arith.mulf %130, %131 : vector<1x128xf32>
    %133 = arith.mulf %132, %132 : vector<1x128xf32>
    %c36 = arith.constant 36 : index
    %c0_45 = arith.constant 0 : index
    %134 = vector.load %arg3[%c36, %c0_45] : memref<48x128xf32, #tpu.memory_space<vmem>>, vector<1x128xf32>
    %135 = arith.mulf %133, %134 : vector<1x128xf32>
    %136 = arith.negf %54 : vector<1x128xf32>
    %137 = math.exp %136 : vector<1x128xf32>
    %cst_46 = arith.constant 1.000000e+00 : f32
    %138 = vector.broadcast %cst_46 : f32 to vector<1x128xf32>
    %139 = arith.addf %138, %137 : vector<1x128xf32>
    %140 = arith.divf %138, %139 : vector<1x128xf32>
    %cst_47 = arith.constant 2.000000e+00 : f32
    %141 = vector.broadcast %cst_47 : f32 to vector<1x128xf32>
    %142 = arith.mulf %140, %141 : vector<1x128xf32>
    %143 = arith.mulf %142, %142 : vector<1x128xf32>
    %c37 = arith.constant 37 : index
    %c0_48 = arith.constant 0 : index
    %144 = vector.load %arg3[%c37, %c0_48] : memref<48x128xf32, #tpu.memory_space<vmem>>, vector<1x128xf32>
    %145 = arith.mulf %143, %144 : vector<1x128xf32>
    %c32 = arith.constant 32 : index
    %c0_49 = arith.constant 0 : index
    %146 = vector.load %arg3[%c32, %c0_49] : memref<48x128xf32, #tpu.memory_space<vmem>>, vector<1x128xf32>
    %c33 = arith.constant 33 : index
    %c0_50 = arith.constant 0 : index
    %147 = vector.load %arg3[%c33, %c0_50] : memref<48x128xf32, #tpu.memory_space<vmem>>, vector<1x128xf32>
    %c34 = arith.constant 34 : index
    %c0_51 = arith.constant 0 : index
    %148 = vector.load %arg3[%c34, %c0_51] : memref<48x128xf32, #tpu.memory_space<vmem>>, vector<1x128xf32>
    %c35 = arith.constant 35 : index
    %c0_52 = arith.constant 0 : index
    %149 = vector.load %arg3[%c35, %c0_52] : memref<48x128xf32, #tpu.memory_space<vmem>>, vector<1x128xf32>
    %cst_53 = arith.constant 5.000000e-01 : f32
    %150 = vector.broadcast %cst_53 : f32 to vector<1x128xf32>
    %151 = arith.mulf %135, %150 : vector<1x128xf32>
    %152 = arith.subf %116, %151 : vector<1x128xf32>
    %cst_54 = arith.constant 5.000000e-01 : f32
    %153 = vector.broadcast %cst_54 : f32 to vector<1x128xf32>
    %154 = arith.mulf %135, %153 : vector<1x128xf32>
    %155 = arith.addf %116, %154 : vector<1x128xf32>
    %cst_55 = arith.constant 5.000000e-01 : f32
    %156 = vector.broadcast %cst_55 : f32 to vector<1x128xf32>
    %157 = arith.mulf %145, %156 : vector<1x128xf32>
    %158 = arith.subf %125, %157 : vector<1x128xf32>
    %cst_56 = arith.constant 5.000000e-01 : f32
    %159 = vector.broadcast %cst_56 : f32 to vector<1x128xf32>
    %160 = arith.mulf %145, %159 : vector<1x128xf32>
    %161 = arith.addf %125, %160 : vector<1x128xf32>
    %cst_57 = arith.constant 5.000000e-01 : f32
    %162 = vector.broadcast %cst_57 : f32 to vector<1x128xf32>
    %163 = arith.mulf %148, %162 : vector<1x128xf32>
    %164 = arith.subf %146, %163 : vector<1x128xf32>
    %cst_58 = arith.constant 5.000000e-01 : f32
    %165 = vector.broadcast %cst_58 : f32 to vector<1x128xf32>
    %166 = arith.mulf %148, %165 : vector<1x128xf32>
    %167 = arith.addf %146, %166 : vector<1x128xf32>
    %cst_59 = arith.constant 5.000000e-01 : f32
    %168 = vector.broadcast %cst_59 : f32 to vector<1x128xf32>
    %169 = arith.mulf %149, %168 : vector<1x128xf32>
    %170 = arith.subf %147, %169 : vector<1x128xf32>
    %cst_60 = arith.constant 5.000000e-01 : f32
    %171 = vector.broadcast %cst_60 : f32 to vector<1x128xf32>
    %172 = arith.mulf %149, %171 : vector<1x128xf32>
    %173 = arith.addf %147, %172 : vector<1x128xf32>
    %174 = arith.minimumf %155, %167 : vector<1x128xf32>
    %175 = arith.maximumf %152, %164 : vector<1x128xf32>
    %176 = arith.subf %174, %175 : vector<1x128xf32>
    %cst_61 = arith.constant 0.000000e+00 : f32
    %177 = vector.broadcast %cst_61 : f32 to vector<1x128xf32>
    %178 = arith.maximumf %176, %177 : vector<1x128xf32>
    %179 = arith.minimumf %161, %173 : vector<1x128xf32>
    %180 = arith.maximumf %158, %170 : vector<1x128xf32>
    %181 = arith.subf %179, %180 : vector<1x128xf32>
    %cst_62 = arith.constant 0.000000e+00 : f32
    %182 = vector.broadcast %cst_62 : f32 to vector<1x128xf32>
    %183 = arith.maximumf %181, %182 : vector<1x128xf32>
    %184 = arith.mulf %178, %183 : vector<1x128xf32>
    %185 = arith.subf %155, %152 : vector<1x128xf32>
    %186 = arith.subf %161, %158 : vector<1x128xf32>
    %187 = arith.subf %167, %164 : vector<1x128xf32>
    %188 = arith.subf %173, %170 : vector<1x128xf32>
    %189 = arith.mulf %185, %186 : vector<1x128xf32>
    %cst_63 = arith.constant 1.000000e-16 : f32
    %190 = vector.broadcast %cst_63 : f32 to vector<1x128xf32>
    %191 = arith.addf %189, %190 : vector<1x128xf32>
    %192 = arith.mulf %187, %188 : vector<1x128xf32>
    %193 = arith.addf %191, %192 : vector<1x128xf32>
    %194 = arith.subf %193, %184 : vector<1x128xf32>
    %195 = arith.divf %184, %194 : vector<1x128xf32>
    %196 = arith.maximumf %155, %167 : vector<1x128xf32>
    %197 = arith.minimumf %152, %164 : vector<1x128xf32>
    %198 = arith.subf %196, %197 : vector<1x128xf32>
    %199 = arith.maximumf %161, %173 : vector<1x128xf32>
    %200 = arith.minimumf %158, %170 : vector<1x128xf32>
    %201 = arith.subf %199, %200 : vector<1x128xf32>
    %202 = arith.mulf %198, %201 : vector<1x128xf32>
    %cst_64 = arith.constant 1.000000e-16 : f32
    %203 = vector.broadcast %cst_64 : f32 to vector<1x128xf32>
    %204 = arith.addf %202, %203 : vector<1x128xf32>
    %205 = arith.subf %204, %194 : vector<1x128xf32>
    %206 = arith.divf %205, %204 : vector<1x128xf32>
    %207 = arith.subf %195, %206 : vector<1x128xf32>
    %cst_65 = arith.constant 0.000000e+00 : f32
    %208 = vector.broadcast %cst_65 : f32 to vector<1x128xf32>
    %209 = arith.cmpf ogt, %107, %208 : vector<1x128xf32>
    %cst_66 = arith.constant 0.000000e+00 : f32
    %210 = vector.broadcast %cst_66 : f32 to vector<1x128xf32>
    %211 = arith.select %209, %207, %210 : vector<1x128xi1>, vector<1x128xf32>
    %cst_67 = arith.constant 1.000000e+00 : f32
    %212 = vector.broadcast %cst_67 : f32 to vector<1x128xf32>
    %213 = arith.subf %212, %211 : vector<1x128xf32>
    %c41 = arith.constant 41 : index
    %c0_68 = arith.constant 0 : index
    %214 = vector.load %arg3[%c41, %c0_68] : memref<48x128xf32, #tpu.memory_space<vmem>>, vector<1x128xf32>
    %215 = arith.mulf %213, %214 : vector<1x128xf32>
    %cst_69 = arith.constant dense<0.000000e+00> : vector<1xf32>
    %216 = vector.multi_reduction <add>, %215, %cst_69 [1] : vector<1x128xf32> to vector<1xf32>
    %217 = vector.shape_cast %216 : vector<1xf32> to vector<1x1xf32>
    %cst_70 = arith.constant dense<0.000000e+00> : vector<1xf32>
    %218 = vector.multi_reduction <add>, %217, %cst_70 [0] : vector<1x1xf32> to vector<1xf32>
    %219 = vector.shape_cast %218 : vector<1xf32> to vector<1x1xf32>
    %c38 = arith.constant 38 : index
    %c0_71 = arith.constant 0 : index
    %220 = vector.load %arg3[%c38, %c0_71] : memref<48x128xf32, #tpu.memory_space<vmem>>, vector<1x128xf32>
    %cst_72 = arith.constant 0.000000e+00 : f32
    %221 = vector.broadcast %cst_72 : f32 to vector<1x128xf32>
    %222 = arith.maximumf %80, %221 : vector<1x128xf32>
    %223 = math.absf %80 : vector<1x128xf32>
    %cst_73 = arith.constant 0.000000e+00 : f32
    %224 = vector.broadcast %cst_73 : f32 to vector<1x128xf32>
    %225 = arith.subf %224, %223 : vector<1x128xf32>
    %226 = math.exp %225 : vector<1x128xf32>
    %227 = math.log1p %226 : vector<1x128xf32>
    %228 = arith.addf %222, %227 : vector<1x128xf32>
    %229 = arith.mulf %80, %220 : vector<1x128xf32>
    %230 = arith.subf %228, %229 : vector<1x128xf32>
    %c39 = arith.constant 39 : index
    %c0_74 = arith.constant 0 : index
    %231 = vector.load %arg3[%c39, %c0_74] : memref<48x128xf32, #tpu.memory_space<vmem>>, vector<1x128xf32>
    %cst_75 = arith.constant 0.000000e+00 : f32
    %232 = vector.broadcast %cst_75 : f32 to vector<1x128xf32>
    %233 = arith.maximumf %93, %232 : vector<1x128xf32>
    %234 = math.absf %93 : vector<1x128xf32>
    %cst_76 = arith.constant 0.000000e+00 : f32
    %235 = vector.broadcast %cst_76 : f32 to vector<1x128xf32>
    %236 = arith.subf %235, %234 : vector<1x128xf32>
    %237 = math.exp %236 : vector<1x128xf32>
    %238 = math.log1p %237 : vector<1x128xf32>
    %239 = arith.addf %233, %238 : vector<1x128xf32>
    %240 = arith.mulf %93, %231 : vector<1x128xf32>
    %241 = arith.subf %239, %240 : vector<1x128xf32>
    %242 = arith.addf %230, %241 : vector<1x128xf32>
    %c40 = arith.constant 40 : index
    %c0_77 = arith.constant 0 : index
    %243 = vector.load %arg3[%c40, %c0_77] : memref<48x128xf32, #tpu.memory_space<vmem>>, vector<1x128xf32>
    %cst_78 = arith.constant 0.000000e+00 : f32
    %244 = vector.broadcast %cst_78 : f32 to vector<1x128xf32>
    %245 = arith.maximumf %106, %244 : vector<1x128xf32>
    %246 = math.absf %106 : vector<1x128xf32>
    %cst_79 = arith.constant 0.000000e+00 : f32
    %247 = vector.broadcast %cst_79 : f32 to vector<1x128xf32>
    %248 = arith.subf %247, %246 : vector<1x128xf32>
    %249 = math.exp %248 : vector<1x128xf32>
    %250 = math.log1p %249 : vector<1x128xf32>
    %251 = arith.addf %245, %250 : vector<1x128xf32>
    %252 = arith.mulf %106, %243 : vector<1x128xf32>
    %253 = arith.subf %251, %252 : vector<1x128xf32>
    %254 = arith.addf %242, %253 : vector<1x128xf32>
    %c42 = arith.constant 42 : index
    %c0_80 = arith.constant 0 : index
    %255 = vector.load %arg3[%c42, %c0_80] : memref<48x128xf32, #tpu.memory_space<vmem>>, vector<1x128xf32>
    %256 = arith.mulf %254, %255 : vector<1x128xf32>
    %cst_81 = arith.constant dense<0.000000e+00> : vector<1xf32>
    %257 = vector.multi_reduction <add>, %256, %cst_81 [1] : vector<1x128xf32> to vector<1xf32>
    %258 = vector.shape_cast %257 : vector<1xf32> to vector<1x1xf32>
    %cst_82 = arith.constant dense<0.000000e+00> : vector<1xf32>
    %259 = vector.multi_reduction <add>, %258, %cst_82 [0] : vector<1x1xf32> to vector<1xf32>
    %260 = vector.shape_cast %259 : vector<1xf32> to vector<1x1xf32>
    %cst_83 = arith.constant 0.000000e+00 : f32
    %261 = vector.broadcast %cst_83 : f32 to vector<1x128xf32>
    %262 = arith.maximumf %211, %261 : vector<1x128xf32>
    %cst_84 = arith.constant 1.000000e+00 : f32
    %263 = vector.broadcast %cst_84 : f32 to vector<1x128xf32>
    %264 = arith.mulf %263, %262 : vector<1x128xf32>
    %cst_85 = arith.constant 0.000000e+00 : f32
    %265 = vector.broadcast %cst_85 : f32 to vector<1x128xf32>
    %266 = arith.addf %265, %264 : vector<1x128xf32>
    %267 = arith.mulf %67, %266 : vector<1x128xf32>
    %c43 = arith.constant 43 : index
    %c0_86 = arith.constant 0 : index
    %268 = vector.load %arg3[%c43, %c0_86] : memref<48x128xf32, #tpu.memory_space<vmem>>, vector<1x128xf32>
    %269 = arith.mulf %267, %268 : vector<1x128xf32>
    %cst_87 = arith.constant dense<0.000000e+00> : vector<1xf32>
    %270 = vector.multi_reduction <add>, %269, %cst_87 [1] : vector<1x128xf32> to vector<1xf32>
    %271 = vector.shape_cast %270 : vector<1xf32> to vector<1x1xf32>
    %cst_88 = arith.constant dense<0.000000e+00> : vector<1xf32>
    %272 = vector.multi_reduction <add>, %271, %cst_88 [0] : vector<1x1xf32> to vector<1xf32>
    %273 = vector.shape_cast %272 : vector<1xf32> to vector<1x1xf32>
    %cst_89 = arith.constant 0.000000e+00 : f32
    %274 = vector.broadcast %cst_89 : f32 to vector<1x1xf32>
    %275 = arith.subf %274, %273 : vector<1x1xf32>
    %276 = tpu.iota {dimensions = array<i32: 0>} : vector<3x1xi32>
    %277 = vector.extract_strided_slice %0 {offsets = [0, 0], sizes = [3, 128], strides = [1, 1]} : vector<8x256xf32> to vector<3x128xf32>
    %c0_i32 = arith.constant 0 : i32
    %278 = vector.broadcast %c0_i32 : i32 to vector<3x1xi32>
    %279 = arith.cmpi eq, %276, %278 : vector<3x1xi32>
    %c3_90 = arith.constant 3 : index
    %280 = memref.load %arg0[%c3_90] : memref<24xf32, #tpu.memory_space<smem>>
    %c1_i32 = arith.constant 1 : i32
    %281 = vector.broadcast %c1_i32 : i32 to vector<3x1xi32>
    %282 = arith.cmpi eq, %276, %281 : vector<3x1xi32>
    %c7_91 = arith.constant 7 : index
    %283 = memref.load %arg0[%c7_91] : memref<24xf32, #tpu.memory_space<smem>>
    %c11_92 = arith.constant 11 : index
    %284 = memref.load %arg0[%c11_92] : memref<24xf32, #tpu.memory_space<smem>>
    %285 = vector.broadcast %283 : f32 to vector<3x1xf32>
    %286 = vector.broadcast %284 : f32 to vector<3x1xf32>
    %287 = arith.select %282, %285, %286 : vector<3x1xi1>, vector<3x1xf32>
    %288 = vector.broadcast %280 : f32 to vector<3x1xf32>
    %289 = arith.select %279, %288, %287 : vector<3x1xi1>, vector<3x1xf32>
    %c0_i32_93 = arith.constant 0 : i32
    %290 = vector.broadcast %c0_i32_93 : i32 to vector<3x1xi32>
    %291 = arith.cmpi eq, %276, %290 : vector<3x1xi32>
    %c0_94 = arith.constant 0 : index
    %292 = memref.load %arg0[%c0_94] : memref<24xf32, #tpu.memory_space<smem>>
    %c1_i32_95 = arith.constant 1 : i32
    %293 = vector.broadcast %c1_i32_95 : i32 to vector<3x1xi32>
    %294 = arith.cmpi eq, %276, %293 : vector<3x1xi32>
    %c4_96 = arith.constant 4 : index
    %295 = memref.load %arg0[%c4_96] : memref<24xf32, #tpu.memory_space<smem>>
    %c8_97 = arith.constant 8 : index
    %296 = memref.load %arg0[%c8_97] : memref<24xf32, #tpu.memory_space<smem>>
    %297 = vector.broadcast %295 : f32 to vector<3x1xf32>
    %298 = vector.broadcast %296 : f32 to vector<3x1xf32>
    %299 = arith.select %294, %297, %298 : vector<3x1xi1>, vector<3x1xf32>
    %300 = vector.broadcast %292 : f32 to vector<3x1xf32>
    %301 = arith.select %291, %300, %299 : vector<3x1xi1>, vector<3x1xf32>
    %302 = vector.extract_strided_slice %277 {offsets = [0, 0], sizes = [1, 128], strides = [1, 1]} : vector<3x128xf32> to vector<1x128xf32>
    %303 = vector.broadcast %301 : vector<3x1xf32> to vector<3x128xf32>
    %304 = vector.broadcast %302 : vector<1x128xf32> to vector<3x128xf32>
    %305 = arith.mulf %303, %304 : vector<3x128xf32>
    %306 = vector.broadcast %289 : vector<3x1xf32> to vector<3x128xf32>
    %307 = arith.addf %306, %305 : vector<3x128xf32>
    %c0_i32_98 = arith.constant 0 : i32
    %308 = vector.broadcast %c0_i32_98 : i32 to vector<3x1xi32>
    %309 = arith.cmpi eq, %276, %308 : vector<3x1xi32>
    %c1_99 = arith.constant 1 : index
    %310 = memref.load %arg0[%c1_99] : memref<24xf32, #tpu.memory_space<smem>>
    %c1_i32_100 = arith.constant 1 : i32
    %311 = vector.broadcast %c1_i32_100 : i32 to vector<3x1xi32>
    %312 = arith.cmpi eq, %276, %311 : vector<3x1xi32>
    %c5_101 = arith.constant 5 : index
    %313 = memref.load %arg0[%c5_101] : memref<24xf32, #tpu.memory_space<smem>>
    %c9_102 = arith.constant 9 : index
    %314 = memref.load %arg0[%c9_102] : memref<24xf32, #tpu.memory_space<smem>>
    %315 = vector.broadcast %313 : f32 to vector<3x1xf32>
    %316 = vector.broadcast %314 : f32 to vector<3x1xf32>
    %317 = arith.select %312, %315, %316 : vector<3x1xi1>, vector<3x1xf32>
    %318 = vector.broadcast %310 : f32 to vector<3x1xf32>
    %319 = arith.select %309, %318, %317 : vector<3x1xi1>, vector<3x1xf32>
    %320 = vector.extract_strided_slice %277 {offsets = [1, 0], sizes = [1, 128], strides = [1, 1]} : vector<3x128xf32> to vector<1x128xf32>
    %321 = vector.broadcast %319 : vector<3x1xf32> to vector<3x128xf32>
    %322 = vector.broadcast %320 : vector<1x128xf32> to vector<3x128xf32>
    %323 = arith.mulf %321, %322 : vector<3x128xf32>
    %324 = arith.addf %307, %323 : vector<3x128xf32>
    %c0_i32_103 = arith.constant 0 : i32
    %325 = vector.broadcast %c0_i32_103 : i32 to vector<3x1xi32>
    %326 = arith.cmpi eq, %276, %325 : vector<3x1xi32>
    %c2_104 = arith.constant 2 : index
    %327 = memref.load %arg0[%c2_104] : memref<24xf32, #tpu.memory_space<smem>>
    %c1_i32_105 = arith.constant 1 : i32
    %328 = vector.broadcast %c1_i32_105 : i32 to vector<3x1xi32>
    %329 = arith.cmpi eq, %276, %328 : vector<3x1xi32>
    %c6_106 = arith.constant 6 : index
    %330 = memref.load %arg0[%c6_106] : memref<24xf32, #tpu.memory_space<smem>>
    %c10_107 = arith.constant 10 : index
    %331 = memref.load %arg0[%c10_107] : memref<24xf32, #tpu.memory_space<smem>>
    %332 = vector.broadcast %330 : f32 to vector<3x1xf32>
    %333 = vector.broadcast %331 : f32 to vector<3x1xf32>
    %334 = arith.select %329, %332, %333 : vector<3x1xi1>, vector<3x1xf32>
    %335 = vector.broadcast %327 : f32 to vector<3x1xf32>
    %336 = arith.select %326, %335, %334 : vector<3x1xi1>, vector<3x1xf32>
    %337 = vector.extract_strided_slice %277 {offsets = [2, 0], sizes = [1, 128], strides = [1, 1]} : vector<3x128xf32> to vector<1x128xf32>
    %338 = vector.broadcast %336 : vector<3x1xf32> to vector<3x128xf32>
    %339 = vector.broadcast %337 : vector<1x128xf32> to vector<3x128xf32>
    %340 = arith.mulf %338, %339 : vector<3x128xf32>
    %341 = arith.addf %324, %340 : vector<3x128xf32>
    %cst_108 = arith.constant 0.000000e+00 : f32
    %342 = vector.broadcast %cst_108 : f32 to vector<3x128xf32>
    %343 = arith.maximumf %341, %342 : vector<3x128xf32>
    %344 = math.absf %341 : vector<3x128xf32>
    %cst_109 = arith.constant 0.000000e+00 : f32
    %345 = vector.broadcast %cst_109 : f32 to vector<3x128xf32>
    %346 = arith.subf %345, %344 : vector<3x128xf32>
    %347 = math.exp %346 : vector<3x128xf32>
    %348 = math.log1p %347 : vector<3x128xf32>
    %349 = arith.addf %343, %348 : vector<3x128xf32>
    %cst_110 = arith.constant dense<0.000000e+00> : vector<3xf32>
    %350 = vector.multi_reduction <add>, %349, %cst_110 [1] : vector<3x128xf32> to vector<3xf32>
    %351 = vector.shape_cast %350 : vector<3xf32> to vector<3x1xf32>
    %cst_111 = arith.constant dense<0.000000e+00> : vector<1xf32>
    %352 = vector.multi_reduction <add>, %351, %cst_111 [0] : vector<3x1xf32> to vector<1xf32>
    %353 = vector.shape_cast %352 : vector<1xf32> to vector<1x1xf32>
    %cst_112 = arith.constant 0.00260416674 : f32
    %354 = vector.broadcast %cst_112 : f32 to vector<1x1xf32>
    %355 = arith.mulf %353, %354 : vector<1x1xf32>
    %356 = arith.addf %275, %355 : vector<1x1xf32>
    %357 = vector.extract_strided_slice %0 {offsets = [0, 128], sizes = [3, 32], strides = [1, 1]} : vector<8x256xf32> to vector<3x32xf32>
    %c0_i32_113 = arith.constant 0 : i32
    %358 = vector.broadcast %c0_i32_113 : i32 to vector<3x1xi32>
    %359 = arith.cmpi eq, %276, %358 : vector<3x1xi32>
    %c15_114 = arith.constant 15 : index
    %360 = memref.load %arg0[%c15_114] : memref<24xf32, #tpu.memory_space<smem>>
    %c1_i32_115 = arith.constant 1 : i32
    %361 = vector.broadcast %c1_i32_115 : i32 to vector<3x1xi32>
    %362 = arith.cmpi eq, %276, %361 : vector<3x1xi32>
    %c19_116 = arith.constant 19 : index
    %363 = memref.load %arg0[%c19_116] : memref<24xf32, #tpu.memory_space<smem>>
    %c23_117 = arith.constant 23 : index
    %364 = memref.load %arg0[%c23_117] : memref<24xf32, #tpu.memory_space<smem>>
    %365 = vector.broadcast %363 : f32 to vector<3x1xf32>
    %366 = vector.broadcast %364 : f32 to vector<3x1xf32>
    %367 = arith.select %362, %365, %366 : vector<3x1xi1>, vector<3x1xf32>
    %368 = vector.broadcast %360 : f32 to vector<3x1xf32>
    %369 = arith.select %359, %368, %367 : vector<3x1xi1>, vector<3x1xf32>
    %c0_i32_118 = arith.constant 0 : i32
    %370 = vector.broadcast %c0_i32_118 : i32 to vector<3x1xi32>
    %371 = arith.cmpi eq, %276, %370 : vector<3x1xi32>
    %c12_119 = arith.constant 12 : index
    %372 = memref.load %arg0[%c12_119] : memref<24xf32, #tpu.memory_space<smem>>
    %c1_i32_120 = arith.constant 1 : i32
    %373 = vector.broadcast %c1_i32_120 : i32 to vector<3x1xi32>
    %374 = arith.cmpi eq, %276, %373 : vector<3x1xi32>
    %c16_121 = arith.constant 16 : index
    %375 = memref.load %arg0[%c16_121] : memref<24xf32, #tpu.memory_space<smem>>
    %c20_122 = arith.constant 20 : index
    %376 = memref.load %arg0[%c20_122] : memref<24xf32, #tpu.memory_space<smem>>
    %377 = vector.broadcast %375 : f32 to vector<3x1xf32>
    %378 = vector.broadcast %376 : f32 to vector<3x1xf32>
    %379 = arith.select %374, %377, %378 : vector<3x1xi1>, vector<3x1xf32>
    %380 = vector.broadcast %372 : f32 to vector<3x1xf32>
    %381 = arith.select %371, %380, %379 : vector<3x1xi1>, vector<3x1xf32>
    %382 = vector.extract_strided_slice %357 {offsets = [0, 0], sizes = [1, 32], strides = [1, 1]} : vector<3x32xf32> to vector<1x32xf32>
    %383 = vector.broadcast %381 : vector<3x1xf32> to vector<3x32xf32>
    %384 = vector.broadcast %382 : vector<1x32xf32> to vector<3x32xf32>
    %385 = arith.mulf %383, %384 : vector<3x32xf32>
    %386 = vector.broadcast %369 : vector<3x1xf32> to vector<3x32xf32>
    %387 = arith.addf %386, %385 : vector<3x32xf32>
    %c0_i32_123 = arith.constant 0 : i32
    %388 = vector.broadcast %c0_i32_123 : i32 to vector<3x1xi32>
    %389 = arith.cmpi eq, %276, %388 : vector<3x1xi32>
    %c13_124 = arith.constant 13 : index
    %390 = memref.load %arg0[%c13_124] : memref<24xf32, #tpu.memory_space<smem>>
    %c1_i32_125 = arith.constant 1 : i32
    %391 = vector.broadcast %c1_i32_125 : i32 to vector<3x1xi32>
    %392 = arith.cmpi eq, %276, %391 : vector<3x1xi32>
    %c17_126 = arith.constant 17 : index
    %393 = memref.load %arg0[%c17_126] : memref<24xf32, #tpu.memory_space<smem>>
    %c21_127 = arith.constant 21 : index
    %394 = memref.load %arg0[%c21_127] : memref<24xf32, #tpu.memory_space<smem>>
    %395 = vector.broadcast %393 : f32 to vector<3x1xf32>
    %396 = vector.broadcast %394 : f32 to vector<3x1xf32>
    %397 = arith.select %392, %395, %396 : vector<3x1xi1>, vector<3x1xf32>
    %398 = vector.broadcast %390 : f32 to vector<3x1xf32>
    %399 = arith.select %389, %398, %397 : vector<3x1xi1>, vector<3x1xf32>
    %400 = vector.extract_strided_slice %357 {offsets = [1, 0], sizes = [1, 32], strides = [1, 1]} : vector<3x32xf32> to vector<1x32xf32>
    %401 = vector.broadcast %399 : vector<3x1xf32> to vector<3x32xf32>
    %402 = vector.broadcast %400 : vector<1x32xf32> to vector<3x32xf32>
    %403 = arith.mulf %401, %402 : vector<3x32xf32>
    %404 = arith.addf %387, %403 : vector<3x32xf32>
    %c0_i32_128 = arith.constant 0 : i32
    %405 = vector.broadcast %c0_i32_128 : i32 to vector<3x1xi32>
    %406 = arith.cmpi eq, %276, %405 : vector<3x1xi32>
    %c14_129 = arith.constant 14 : index
    %407 = memref.load %arg0[%c14_129] : memref<24xf32, #tpu.memory_space<smem>>
    %c1_i32_130 = arith.constant 1 : i32
    %408 = vector.broadcast %c1_i32_130 : i32 to vector<3x1xi32>
    %409 = arith.cmpi eq, %276, %408 : vector<3x1xi32>
    %c18_131 = arith.constant 18 : index
    %410 = memref.load %arg0[%c18_131] : memref<24xf32, #tpu.memory_space<smem>>
    %c22_132 = arith.constant 22 : index
    %411 = memref.load %arg0[%c22_132] : memref<24xf32, #tpu.memory_space<smem>>
    %412 = vector.broadcast %410 : f32 to vector<3x1xf32>
    %413 = vector.broadcast %411 : f32 to vector<3x1xf32>
    %414 = arith.select %409, %412, %413 : vector<3x1xi1>, vector<3x1xf32>
    %415 = vector.broadcast %407 : f32 to vector<3x1xf32>
    %416 = arith.select %406, %415, %414 : vector<3x1xi1>, vector<3x1xf32>
    %417 = vector.extract_strided_slice %357 {offsets = [2, 0], sizes = [1, 32], strides = [1, 1]} : vector<3x32xf32> to vector<1x32xf32>
    %418 = vector.broadcast %416 : vector<3x1xf32> to vector<3x32xf32>
    %419 = vector.broadcast %417 : vector<1x32xf32> to vector<3x32xf32>
    %420 = arith.mulf %418, %419 : vector<3x32xf32>
    %421 = arith.addf %404, %420 : vector<3x32xf32>
    %cst_133 = arith.constant 0.000000e+00 : f32
    %422 = vector.broadcast %cst_133 : f32 to vector<3x32xf32>
    %423 = arith.maximumf %421, %422 : vector<3x32xf32>
    %424 = math.absf %421 : vector<3x32xf32>
    %cst_134 = arith.constant 0.000000e+00 : f32
    %425 = vector.broadcast %cst_134 : f32 to vector<3x32xf32>
    %426 = arith.subf %425, %424 : vector<3x32xf32>
    %427 = math.exp %426 : vector<3x32xf32>
    %428 = math.log1p %427 : vector<3x32xf32>
    %429 = arith.addf %423, %428 : vector<3x32xf32>
    %cst_135 = arith.constant dense<0.000000e+00> : vector<3xf32>
    %430 = vector.multi_reduction <add>, %429, %cst_135 [1] : vector<3x32xf32> to vector<3xf32>
    %431 = vector.shape_cast %430 : vector<3xf32> to vector<3x1xf32>
    %cst_136 = arith.constant dense<0.000000e+00> : vector<1xf32>
    %432 = vector.multi_reduction <add>, %431, %cst_136 [0] : vector<3x1xf32> to vector<1xf32>
    %433 = vector.shape_cast %432 : vector<1xf32> to vector<1x1xf32>
    %cst_137 = arith.constant 0.010416667 : f32
    %434 = vector.broadcast %cst_137 : f32 to vector<1x1xf32>
    %435 = arith.mulf %433, %434 : vector<1x1xf32>
    %436 = arith.addf %356, %435 : vector<1x1xf32>
    %cst_138 = arith.constant 5.000000e-02 : f32
    %437 = vector.broadcast %cst_138 : f32 to vector<1x1xf32>
    %438 = arith.mulf %219, %437 : vector<1x1xf32>
    %cst_139 = arith.constant 1.000000e+00 : f32
    %439 = vector.broadcast %cst_139 : f32 to vector<1x1xf32>
    %440 = arith.mulf %436, %439 : vector<1x1xf32>
    %cst_140 = arith.constant 5.800000e-01 : f32
    %441 = vector.broadcast %cst_140 : f32 to vector<1x1xf32>
    %442 = arith.mulf %260, %441 : vector<1x1xf32>
    %443 = tpu.iota {dimensions = array<i32: 1>} : vector<1x128xi32>
    %c0_i32_141 = arith.constant 0 : i32
    %444 = vector.broadcast %c0_i32_141 : i32 to vector<1x128xi32>
    %445 = arith.cmpi eq, %443, %444 : vector<1x128xi32>
    %cst_142 = arith.constant 0.000000e+00 : f32
    %446 = vector.shape_cast %438 : vector<1x1xf32> to vector<1x1xf32>
    %447 = vector.broadcast %446 : vector<1x1xf32> to vector<1x128xf32>
    %448 = vector.broadcast %cst_142 : f32 to vector<1x128xf32>
    %449 = arith.select %445, %447, %448 : vector<1x128xi1>, vector<1x128xf32>
    %c1_i32_143 = arith.constant 1 : i32
    %450 = vector.broadcast %c1_i32_143 : i32 to vector<1x128xi32>
    %451 = arith.cmpi eq, %443, %450 : vector<1x128xi32>
    %cst_144 = arith.constant 0.000000e+00 : f32
    %452 = vector.shape_cast %440 : vector<1x1xf32> to vector<1x1xf32>
    %453 = vector.broadcast %452 : vector<1x1xf32> to vector<1x128xf32>
    %454 = vector.broadcast %cst_144 : f32 to vector<1x128xf32>
    %455 = arith.select %451, %453, %454 : vector<1x128xi1>, vector<1x128xf32>
    %456 = arith.addf %449, %455 : vector<1x128xf32>
    %c2_i32 = arith.constant 2 : i32
    %457 = vector.broadcast %c2_i32 : i32 to vector<1x128xi32>
    %458 = arith.cmpi eq, %443, %457 : vector<1x128xi32>
    %cst_145 = arith.constant 0.000000e+00 : f32
    %459 = vector.shape_cast %442 : vector<1x1xf32> to vector<1x1xf32>
    %460 = vector.broadcast %459 : vector<1x1xf32> to vector<1x128xf32>
    %461 = vector.broadcast %cst_145 : f32 to vector<1x128xf32>
    %462 = arith.select %458, %460, %461 : vector<1x128xi1>, vector<1x128xf32>
    %463 = arith.addf %456, %462 : vector<1x128xf32>
    %c0_146 = arith.constant 0 : index
    %c0_147 = arith.constant 0 : index
    %464 = vector.load %arg4[%c0_146, %c0_147] : memref<1x128xf32, #tpu.memory_space<vmem>>, vector<1x128xf32>
    tpu.vector_store %arg4[%c0_146, %c0_147], %463 {strides = array<i32>} : memref<1x128xf32, #tpu.memory_space<vmem>>, vector<1x128xf32>,
    return
  }
}

</mosaic_0001>

<bundles_post_ra>
// kernel: forward_loss.1
= control target key start
LH: loop header
LB: loop body
LE: loop exit
PB: predicated region body
PF: predicated region fallthrough
CT: control target
= control target key end

     0   :  { %9 = vsyncpa [#allocation3], 0  ;;  %s1120_s0 = inlined_call_operand.vmem [shape: f32[24], index: 0, kind: input, shape index: {}]   ;;  %s1121_s1 = inlined_call_operand.vmem [shape: f32[8,256], index: 1, kind: input, shape index: {}]   ;;  %s1122_s2 = inlined_call_operand.vmem [shape: f32[256,128], index: 2, kind: input, shape index: {}]   ;;  %s1123_s3 = inlined_call_operand.vmem [shape: f32[48,128], index: 3, kind: input, shape index: {}]   ;;  %s1124_s4 = inlined_call_operand.vmem [shape: f32[1,128], index: 4, kind: output, shape index: {}]  }
   0x1   :  { %s16_s17 = sshll.u32 %s1120_s0, 4  ;;  %s17_s17 = int_to_ptr.vmem [resolvable:$true] %s16_s17 }
   0x2   :  { %s701_s18 = scalar_lea.vmem %s17_s17, 16  ;;  %p706_p1 = scmp.lt.s32.totalorder %s17_s17, %s17_s17 }
   0x3   :  { %p702_p0 = scmp.ne.s32.totalorder %s17_s17, %s701_s18  ;;  %p707_p2 = scmp.lt.s32.totalorder %s701_s18, %s701_s18 }
   0x5   :  { %p708_p3 = por %p707_p2, %p706_p1 }
   0x7   :  { %p709_p4 = pnand %p708_p3, %p702_p0 }
   0x9   :  { %712 = shalt.err (!%p709_p4)
}
   0xa   :  { %s715_s19 = smov [#allocation2]  }
   0xb   :  { %19 = dma.vmem_to_smem %s17_s17, 16, %s715_s19, [#allocation3]  }
   0xc   :  { %713 = dma.done.wait [#allocation3], 16  }
   0xd   :  { %714 = vsyncadd [#allocation3], 4294967280 }
   0xe   :  { %29 = sfence }
   0xf   :  { %v48_v0 = vld [vmem:[%s1122_s2 + $0x80] sm:$0xff]  ;;  %v49_v1 = vld [vmem:[%s1122_s2 + $0x88] sm:$0xff]  ;;  %v50_v5 = vld [vmem:[%s1122_s2 + $0x90] sm:$0xff]  ;;  %v386_v50 = vlaneseq  ;;  %s573_s7 = sld [smem:[#allocation2 + $0x4]]  ;;  %s574_s8 = sld [smem:[#allocation2 + $0x8]]  ;;  %vm455_vm3 = vcmask 1042432  }
  0x10   :  { %v32_v2 = vld [vmem:[%s1122_s2] sm:$0xff]  ;;  %v628_v3 = vpack.c.bf16 %v49_v1, %v48_v0  ;;  %v33_v4 = vld [vmem:[%s1122_s2 + $0x8] sm:$0xff]  ;;  %v51_v6 = vld [vmem:[%s1122_s2 + $0x98] sm:$0xff]  ;;  %s849_s9 = sld [smem:[#allocation2 + $0x10]]  ;;  %s576_s10 = sld [smem:[#allocation2 + $0x5]]  ;;  %vm533_vm5 = vcmask 256000  }
  0x11   :  { %v630_v7 = vpack.c.bf16 %v33_v4, %v32_v2  ;;  %v632_v8 = vpack.c.bf16 %v51_v6, %v50_v5  ;;  %v34_v9 = vld [vmem:[%s1122_s2 + $0x10] sm:$0xff]  ;;  %v35_v10 = vld [vmem:[%s1122_s2 + $0x18] sm:$0xff]  ;;  %v52_v11 = vld [vmem:[%s1122_s2 + $0xa0] sm:$0xff]  ;;  %s577_s11 = sld [smem:[#allocation2 + $0x9]]  ;;  %s586_s12 = sld [smem:[#allocation2 + $0x14]]  ;;  %v854_v51 = vshrl.u32 %v386_v50, 7 }
  0x12   :  { %629 = vmatprep.subr.bf16.mxu0 %v628_v3  ;;  %v53_v12 = vld [vmem:[%s1122_s2 + $0xa8] sm:$0xff]  ;;  %v634_v13 = vpack.c.bf16 %v35_v10, %v34_v9  ;;  %v36_v15 = vld [vmem:[%s1122_s2 + $0x20] sm:$0xff]  ;;  %v54_v17 = vld [vmem:[%s1122_s2 + $0xb0] sm:$0xff]  ;;  %s851_s13 = sld [smem:[#allocation2]]  ;;  %s858_s14 = sld [smem:[#allocation2 + $0x15]]  ;;  %vm309_vm9 = vcmask 1040384  }
  0x13   :  { %631 = vmatpush3.bf16.msra.mxu0 %v630_v7  ;;  %v636_v14 = vpack.c.bf16 %v53_v12, %v52_v11  ;;  %v37_v16 = vld [vmem:[%s1122_s2 + $0x28] sm:$0xff]  ;;  %v55_v18 = vld [vmem:[%s1122_s2 + $0xb8] sm:$0xff]  ;;  %v38_v21 = vld [vmem:[%s1122_s2 + $0x30] sm:$0xff]  ;;  %s862_s15 = sld [smem:[#allocation2 + $0xc]]  ;;  %vm390_vm0 = vcmp.eq.s32.totalorder %v854_v51, 1  ;;  %s865_s16 = sld [smem:[#allocation2 + $0xd]] }
  0x14   :  { %633 = vmatprep.subr.bf16.mxu0 %v632_v8  ;;  %v638_v19 = vpack.c.bf16 %v37_v16, %v36_v15  ;;  %v640_v20 = vpack.c.bf16 %v55_v18, %v54_v17  ;;  %v39_v22 = vld [vmem:[%s1122_s2 + $0x38] sm:$0xff]  ;;  %v56_v23 = vld [vmem:[%s1122_s2 + $0xc0] sm:$0xff]  ;;  %v57_v24 = vld [vmem:[%s1122_s2 + $0xc8] sm:$0xff]  ;;  %v408_v54 = vsub.s32 0, %v854_v51  ;;  %vm388_vm1 = vcmp.eq.s32.totalorder %v854_v51, 0  ;;  %s875_s17 = sld [smem:[#allocation2 + $0x7]] }
  0x15   :  { %v801_v25 = vld [vmem:[%s1121_s1 + $0x8] sm:$0xff]  ;;  %v642_v26 = vpack.c.bf16 %v39_v22, %v38_v21  ;;  %v644_v27 = vpack.c.bf16 %v57_v24, %v56_v23  ;;  %v40_v28 = vld [vmem:[%s1122_s2 + $0x40] sm:$0xff]  ;;  %v58_v30 = vld [vmem:[%s1122_s2 + $0xd0] sm:$0xff]  ;;  %v401_v52 = vstv %s573_s7  ;;  %v422_v55 = vsub.s32 1, %v854_v51  ;;  %s877_s18 = sld [smem:[#allocation2 + $0xb]]  ;;  %s579_s20 = sld [smem:[#allocation2 + $0x6]] }
  0x16   :  { %128 = vmatprep.mubr.f32.mxu0 %v801_v25  ;;  %v41_v29 = vld [vmem:[%s1122_s2 + $0x48] sm:$0xff]  ;;  %v59_v31 = vld [vmem:[%s1122_s2 + $0xd8] sm:$0xff]  ;;  %v42_v34 = vld [vmem:[%s1122_s2 + $0x50] sm:$0xff]  ;;  %v402_v53 = vstv %s574_s8  ;;  %s570_s19 = sld [smem:[#allocation2 + $0x3]]  ;;  %v436_v3 = vsub.s32 2, %v854_v51  ;;  %s580_s21 = sld [smem:[#allocation2 + $0xa]]  ;;  %v487_v12 = vrot.slane %v801_v25, %v408_v54 }
  0x17   :  { %635 = vmatpush3.bf16.msra.mxu0 %v634_v13  ;;  %v646_v32 = vpack.c.bf16 %v41_v29, %v40_v28  ;;  %v648_v33 = vpack.c.bf16 %v59_v31, %v58_v30  ;;  %v43_v35 = vld [vmem:[%s1122_s2 + $0x58] sm:$0xff]  ;;  %v60_v36 = vld [vmem:[%s1122_s2 + $0xe0] sm:$0xff]  ;;  %v61_v37 = vld [vmem:[%s1122_s2 + $0xe8] sm:$0xff]  ;;  %v415_v56 = vstv %s576_s10  ;;  %v403_v60 = vsel %vm390_vm0, %v401_v52, %v402_v53  ;;  %s578_s22 = sld [smem:[#allocation2 + $0x2]]  ;;  %s894_s23 = sld [smem:[#allocation2 + $0x13]] }
  0x18   :  { %637 = vmatprep.subr.bf16.mxu0 %v636_v14  ;;  %v650_v38 = vpack.c.bf16 %v43_v35, %v42_v34  ;;  %v652_v39 = vpack.c.bf16 %v61_v37, %v60_v36  ;;  %v44_v40 = vld [vmem:[%s1122_s2 + $0x60] sm:$0xff]  ;;  %v45_v41 = vld [vmem:[%s1122_s2 + $0x68] sm:$0xff]  ;;  %v62_v42 = vld [vmem:[%s1122_s2 + $0xf0] sm:$0xff]  ;;  %v416_v57 = vstv %s577_s11  ;;  %s583_s0 = sld [smem:[#allocation2 + $0x17]]  ;;  %s899_s25 = sld [smem:[#allocation2 + $0xe]]  ;;  %v501_v14 = vrot.slane %v801_v25, %v422_v55 }
  0x19   :  { %v63_v43 = vld [vmem:[%s1122_s2 + $0xf8] sm:$0xff]  ;;  %v654_v44 = vpack.c.bf16 %v45_v41, %v44_v40  ;;  %v46_v46 = vld [vmem:[%s1122_s2 + $0x70] sm:$0xff]  ;;  %v30_v49 = vld [vmem:[%s1121_s1] sm:$0xff]  ;;  %s860_s1 = sld [smem:[#allocation2 + $0x1]]  ;;  %v479_v58 = vstv %s849_s9  ;;  %v417_v1 = vsel %vm390_vm0, %v415_v56, %v416_v57  ;;  %s581_s24 = sld [smem:[#allocation2 + $0xf]]  ;;  %v515_v22 = vrot.slane %v801_v25, %v436_v3 }
  0x1a   :  { %v656_v45 = vpack.c.bf16 %v63_v43, %v62_v42  ;;  %v47_v47 = vld [vmem:[%s1122_s2 + $0x78] sm:$0xff]  ;;  %s856_s2 = sld [smem:[#allocation2 + $0x11]]  ;;  %v480_v59 = vstv %s586_s12  ;;  %v404_v61 = vstv %s851_s13  ;;  %v494_v63 = vstv %s858_s14  ;;  %s591_s26 = sld [smem:[#allocation2 + $0x12]] }
  0x1b   :  { %639 = vmatpush3.bf16.msra.mxu0 %v638_v19  ;;  %v658_v48 = vpack.c.bf16 %v47_v47, %v46_v46  ;;  %v409_v0 = vrot.slane %v30_v49, %v408_v54  ;;  %v481_v4 = vsel %vm390_vm0, %v479_v58, %v480_v59  ;;  %v482_v5 = vstv %s862_s15  ;;  %s592_s27 = sld [smem:[#allocation2 + $0x16]] }
  0x1c   :  { %641 = vmatprep.subr.bf16.mxu0 %v640_v20  ;;  %v405_v6 = vsel %vm388_vm1, %v404_v61, %v403_v60  ;;  %v423_v7 = vrot.slane %v30_v49, %v422_v55  ;;  %v496_v9 = vstv %s865_s16  ;;  %v483_v11 = vsel %vm388_vm1, %v482_v5, %v481_v4 }
  0x1d   :  { %v410_v13 = vmul.f32 %v409_v0, %v405_v6  ;;  %v437_v15 = vrot.slane %v30_v49, %v436_v3  ;;  %v393_v16 = vstv %s875_s17  ;;  %v394_v17 = vstv %s877_s18 }
  0x1e   :  { %v395_v20 = vsel %vm390_vm0, %v393_v16, %v394_v17  ;;  %v396_v21 = vstv %s570_s19  ;;  %v429_v24 = vstv %s579_s20  ;;  %v432_v30 = vstv %s578_s22  ;;  %v190_v17 = vld [vmem:[%s1123_s3 + $0xf] sm:$0x1] }
  0x1f   :  { %643 = vmatpush3.bf16.msra.mxu0 %v642_v26  ;;  %v418_v2 = vstv %s860_s1  ;;  %v397_v23 = vsel %vm388_vm1, %v396_v21, %v395_v20  ;;  %v430_v26 = vstv %s580_s21  ;;  %v472_v34 = vstv %s583_s0  ;;  %v200_v20 = vld [vmem:[%s1123_s3 + $0x12] sm:$0x1] }
  0x20   :  { %645 = vmatprep.subr.bf16.mxu0 %v644_v27  ;;  %v493_v62 = vstv %s856_s2  ;;  %v419_v10 = vsel %vm388_vm1, %v418_v2, %v417_v1  ;;  %v488_v27 = vmul.f32 %v487_v12, %v483_v11  ;;  %v411_v28 = vadd.f32 %v410_v13, %v397_v23  ;;  %v210_v21 = vld [vmem:[%s1123_s3 + $0x15] sm:$0x1]  ;;  %v193_v23 = vld [vmem:[%s1123_s3 + $0x10] sm:$0x1] }
  0x21   :  { %v495_v8 = vsel %vm390_vm0, %v493_v62, %v494_v63  ;;  %v424_v19 = vmul.f32 %v423_v7, %v419_v10  ;;  %v431_v29 = vsel %vm390_vm0, %v429_v24, %v430_v26  ;;  %v474_v37 = vstv %s581_s24  ;;  %v199_v24 = vld [vmem:[%s1123_s3 + $0x1e] sm:$0x1]  ;;  %v135_v26 = vld [vmem:[%s1123_s3] sm:$0x1] }
  0x22   :  { %v497_v18 = vsel %vm388_vm1, %v496_v9, %v495_v8  ;;  %v508_v40 = vstv %s592_s27  ;;  %v510_v41 = vstv %s899_s25 }
  0x23   :  { %647 = vmatpush3.bf16.msra.mxu0 %v646_v32  ;;  %v502_v31 = vmul.f32 %v501_v14, %v497_v18  ;;  %v433_v32 = vsel %vm388_vm1, %v432_v30, %v431_v29  ;;  %v425_v35 = vadd.f32 %v424_v19, %v411_v28  ;;  %v189_v19 = vld [vmem:[%s1123_s3 + $0x1d] sm:$0x1]  ;;  %v209_v28 = vld [vmem:[%s1123_s3 + $0x1f] sm:$0x1]  ;;  %v150_v29 = vld [vmem:[%s1123_s3 + $0x3] sm:$0x1] }
  0x24   :  { %649 = vmatprep.subr.bf16.mxu0 %v648_v33  ;;  %v471_v33 = vstv %s894_s23  ;;  %v438_v25 = vmul.f32 %v437_v15, %v433_v32 }
  0x25   :  { %v473_v36 = vsel %vm390_vm0, %v471_v33, %v472_v34  ;;  %v213_v34 = vld [vmem:[%s1123_s3 + $0x16] sm:$0x1] }
  0x26   :  { %v439_v42 = vadd.f32 %v438_v25, %v425_v35  ;;  %v160_v35 = vld [vmem:[%s1123_s3 + $0x6] sm:$0x1]  ;;  %v196_v25 = vld [vmem:[%s1123_s3 + $0x11] sm:$0x1] }
  0x27   :  { %651 = vmatpush3.bf16.msra.mxu0 %v650_v38  ;;  %v475_v38 = vsel %vm388_vm1, %v474_v37, %v473_v36  ;;  %v134_v37 = vld [vmem:[%s1123_s3 + $0x18] sm:$0x1] }
  0x28   :  { %653 = vmatprep.subr.bf16.mxu0 %v652_v39  ;;  %v507_v39 = vstv %s591_s26  ;;  %v489_v43 = vadd.f32 %v488_v27, %v475_v38  ;;  %v441_v46 = vand.u32 2147483647, %v439_v42  ;;  %v440_v3 = vmax.f32 %v439_v42, 0.0  ;;  %v203_v27 = vld [vmem:[%s1123_s3 + $0x13] sm:$0x1] }
  0x2a   :  { %v503_v47 = vadd.f32 %v502_v31, %v489_v43  ;;  %v206_v43 = vld [vmem:[%s1123_s3 + $0x14] sm:$0x1] }
  0x2b   :  { %655 = vmatpush3.bf16.msra.mxu0 %v654_v44  ;;  %v509_v44 = vsel %vm390_vm0, %v507_v39, %v508_v40  ;;  %v138_v39 = vld [vmem:[%s1123_s3 + $0x1] sm:$0x1] }
  0x2c   :  { %657 = vmatprep.subr.bf16.mxu0 %v656_v45  ;;  %v511_v45 = vsel %vm388_vm1, %v510_v41, %v509_v44  ;;  %v216_v44 = vld [vmem:[%s1123_s3 + $0x17] sm:$0x1] }
  0x2f   :  { %659 = vmatpush3.bf16.msra.mxu0 %v658_v48  ;;  %v516_v48 = vmul.f32 %v515_v22, %v511_v45 }
  0x31   :  { %v517_v52 = vadd.f32 %v516_v48, %v503_v47 }
  0x32   :  { %129 = vmatmul.mubr.f32.vlgmr.msra.gmra.mrb[0].mxu0 %v30_v49  ;;  %v442_v49 = vsub.f32 0.0, %v441_v46 }
  0x33   :  { %v519_v54 = vand.u32 2147483647, %v517_v52  ;;  %v518_v10 = vmax.f32 %v517_v52, 0.0  ;;  %v153_v52 = vld [vmem:[%s1123_s3 + $0x4] sm:$0x1] }
  0x34   :  { %v443_v53 = vmul.f32 1.442695, %v442_v49  ;;  %v149_v49 = vld [vmem:[%s1123_s3 + $0x19] sm:$0x1] }
  0x35   :  { %v520_v55 = vsub.f32 0.0, %v519_v54 }
  0x36   :  { %661 = vpow2.f32 %v443_v53 }
  0x37   :  { %v521_v56 = vmul.f32 1.442695, %v520_v55 }
  0x39   :  { %663 = vpow2.f32 %v521_v56 }
  0x40   :  { %v662_v57 = vpop.eup %661 }
  0x41   :  { %v445_v58 = vadd.f32 1.0, %v662_v57  ;;  %v448_v60 = vmul.f32 -0.5, %v662_v57  ;;  %v451_v63 = vand.u32 2147483647, %v662_v57 }
  0x43   :  { %665 = vlog2.f32 %v445_v58  ;;  %v664_v59 = vpop.eup %663  ;;  %v449_v51 = vadd.f32 1.0, %v448_v60  ;;  %vm452_vm2 = vcmp.lt.f32.partialorder %v451_v63, 0.0004427343  ;;  %v159_v58 = vld [vmem:[%s1123_s3 + $0x1a] sm:$0x1] }
  0x44   :  { %v523_v61 = vadd.f32 1.0, %v664_v59  ;;  %v526_v62 = vmul.f32 -0.5, %v664_v59  ;;  %v529_v4 = vand.u32 2147483647, %v664_v59  ;;  %v144_v63 = vld [vmem:[%s1123_s3 + $0x2] sm:$0x1] }
  0x45   :  { %v450_v0 = vmul.f32 %v662_v57, %v449_v51 }
  0x46   :  { %667 = vlog2.f32 %v523_v61  ;;  %v527_v1 = vadd.f32 1.0, %v526_v62  ;;  %vm530_vm4 = vcmp.lt.f32.partialorder %v529_v4, 0.0004427343  ;;  %v156_v4 = vld [vmem:[%s1123_s3 + $0x5] sm:$0x1] }
  0x48   :  { %v528_v7 = vmul.f32 %v664_v59, %v527_v1  ;;  %v163_v59 = vld [vmem:[%s1123_s3 + $0x7] sm:$0x1] }
  0x4d   :  { %v666_v2 = vpop.eup %665 }
  0x4e   :  { %v447_v5 = vmul.f32 0.6931472, %v666_v2 }
  0x50   :  { %v453_v6 = vsel %vm452_vm2, %v450_v0, %v447_v5  ;;  %v668_v8 = vpop.eup %667 }
  0x51   :  { %v454_v9 = vadd.f32 %v453_v6, %v440_v3  ;;  %v525_v11 = vmul.f32 0.6931472, %v668_v8 }
  0x53   :  { %v456_v12 = vsel %vm455_vm3, %v454_v9, 0.0  ;;  %v531_v13 = vsel %vm530_vm4, %v528_v7, %v525_v11  ;;  %v166_v11 = vld [vmem:[%s1123_s3 + $0x8] sm:$0x1] }
  0x54   :  { %457 = vadd.xlane.f32.xlu0 %v456_v12  ;;  %v532_v14 = vadd.f32 %v531_v13, %v518_v10  ;;  %v170_v12 = vld [vmem:[%s1123_s3 + $0x9] sm:$0x1] }
  0x56   :  { %v534_v15 = vsel %vm533_vm5, %v532_v14, 0.0 }
  0x58   :  { %535 = vadd.xlane.f32.xlu0 %v534_v15  ;;  %v173_v15 = vld [vmem:[%s1123_s3 + $0xa] sm:$0x1] }
 0x105   :  { %v625_v16 = vpop.f32.mrb[0].mxu0 }
 0x106   :  { %v626_v18 = vpop.f32.mrb[1].mxu0 }
 0x107   :  { %v938_v22 = vadd.f32 %v626_v18, %v625_v16 }
 0x109   :  { %v959_v30 = vrot.slane %v938_v22, 1  ;;  %v962_v31 = vrot.slane %v938_v22, 2  ;;  %v191_v32 = vmul.f32 %v938_v22, %v190_v17  ;;  %v201_v33 = vmul.f32 %v938_v22, %v200_v20  ;;  %v169_v20 = vld [vmem:[%s1123_s3 + $0x1b] sm:$0x1] }
 0x10a   :  { %v211_v36 = vmul.f32 %v938_v22, %v210_v21  ;;  %v136_v38 = vmul.f32 %v938_v22, %v135_v26  ;;  %v151_v45 = vmul.f32 %v938_v22, %v150_v29  ;;  %v161_v53 = vmul.f32 %v938_v22, %v160_v35  ;;  %v176_v35 = vld [vmem:[%s1123_s3 + $0xb] sm:$0x1] }
 0x10b   :  { %v192_v40 = vadd.f32 %v191_v32, %v189_v19  ;;  %v194_v41 = vmul.f32 %v193_v23, %v959_v30  ;;  %v202_v42 = vadd.f32 %v201_v33, %v199_v24  ;;  %v204_v46 = vmul.f32 %v203_v27, %v959_v30  ;;  %v180_v27 = vld [vmem:[%s1123_s3 + $0xc] sm:$0x1] }
 0x10c   :  { %v212_v47 = vadd.f32 %v211_v36, %v209_v28  ;;  %v214_v48 = vmul.f32 %v213_v34, %v959_v30  ;;  %v197_v55 = vmul.f32 %v196_v25, %v962_v31  ;;  %v137_v56 = vadd.f32 %v136_v38, %v134_v37  ;;  %v183_v28 = vld [vmem:[%s1123_s3 + $0xd] sm:$0x1]  ;;  %v179_v38 = vld [vmem:[%s1123_s3 + $0x1c] sm:$0x1] }
 0x10d   :  { %v195_v54 = vadd.f32 %v194_v41, %v192_v40  ;;  %v142_v57 = vmul.f32 %v959_v30, %v138_v39  ;;  %v205_v60 = vadd.f32 %v204_v46, %v202_v42  ;;  %v207_v61 = vmul.f32 %v206_v43, %v962_v31 }
 0x10e   :  { %v215_v51 = vadd.f32 %v214_v48, %v212_v47  ;;  %v217_v62 = vmul.f32 %v216_v44, %v962_v31  ;;  %v152_v2 = vadd.f32 %v151_v45, %v149_v49  ;;  %v154_v3 = vmul.f32 %v153_v52, %v959_v30  ;;  %v186_v44 = vld [vmem:[%s1123_s3 + $0xe] sm:$0x1] }
 0x10f   :  { %v1013_v0 = vadd.f32 %v197_v55, %v195_v54  ;;  %v143_v1 = vadd.f32 %v142_v57, %v137_v56  ;;  %v1019_v5 = vadd.f32 %v207_v61, %v205_v60  ;;  %v162_v7 = vadd.f32 %v161_v53, %v159_v58 }
 0x110   :  { %v1021_v6 = vadd.f32 %v217_v62, %v215_v51  ;;  %v164_v8 = vmul.f32 %v163_v59, %v959_v30  ;;  %v147_v10 = vmul.f32 %v962_v31, %v144_v63  ;;  %v157_v14 = vmul.f32 %v156_v4, %v962_v31 }
 0x111   :  { %v316_v9 = vand.u32 2147483647, %v1013_v0  ;;  %v334_v13 = vand.u32 2147483647, %v1019_v5  ;;  %v155_v19 = vadd.f32 %v154_v3, %v152_v2  ;;  %v167_v24 = vmul.f32 %v166_v11, %v962_v31 }
 0x112   :  { %v353_v17 = vand.u32 2147483647, %v1021_v6  ;;  %v148_v18 = vadd.f32 %v147_v10, %v143_v1  ;;  %v165_v23 = vadd.f32 %v164_v8, %v162_v7  ;;  %v171_v26 = vmul.f32 %v938_v22, %v170_v12 }
 0x113   :  { %v317_v16 = vsub.f32 0.0, %v316_v9  ;;  %v335_v21 = vsub.f32 0.0, %v334_v13  ;;  %v158_v33 = vadd.f32 %v157_v14, %v155_v19  ;;  %v174_v34 = vmul.f32 %v173_v15, %v959_v30  ;;  %v314_v9 = vld [vmem:[%s1123_s3 + $0x26] sm:$0x1] }
 0x114   :  { %v354_v32 = vsub.f32 0.0, %v353_v17  ;;  %v168_v36 = vadd.f32 %v167_v24, %v165_v23  ;;  %v172_v37 = vadd.f32 %v171_v26, %v169_v20  ;;  %v181_v40 = vmul.f32 %v938_v22, %v180_v27 }
 0x115   :  { %v318_v29 = vmul.f32 1.442695, %v317_v16  ;;  %v336_v25 = vmul.f32 1.442695, %v335_v21  ;;  %v184_v41 = vmul.f32 %v183_v28, %v959_v30  ;;  %v177_v43 = vmul.f32 %v176_v35, %v962_v31  ;;  %v332_v21 = vld [vmem:[%s1123_s3 + $0x27] sm:$0x1] }
 0x116   :  { %v355_v39 = vmul.f32 1.442695, %v354_v32  ;;  %v175_v42 = vadd.f32 %v174_v34, %v172_v37  ;;  %v564_v45 = vmul.f32 -1.442695, %v148_v18  ;;  %v182_v46 = vadd.f32 %v181_v40, %v179_v38  ;;  %v258_v40 = vld [vmem:[%s1123_s3 + $0x22] sm:$0x1] }
 0x117   :  { %669 = vpow2.f32 %v318_v29  ;;  %v566_v47 = vmul.f32 -1.442695, %v158_v33  ;;  %v568_v48 = vmul.f32 -1.442695, %v168_v36  ;;  %v187_v22 = vmul.f32 %v186_v44, %v962_v31 }
 0x118   :  { %671 = vpow2.f32 %v336_v25  ;;  %v178_v49 = vadd.f32 %v177_v43, %v175_v42  ;;  %v185_v52 = vadd.f32 %v184_v41, %v182_v46  ;;  %v315_v17 = vmax.f32 %v1013_v0, 0.0 }
 0x119   :  { %673 = vpow2.f32 %v355_v39  ;;  %v330_v20 = vmul.f32 %v314_v9, %v1013_v0  ;;  %v333_v24 = vmax.f32 %v1019_v5, 0.0  ;;  %v351_v0 = vld [vmem:[%s1123_s3 + $0x28] sm:$0x1]  ;;  %v352_v25 = vmax.f32 %v1021_v6, 0.0 }
 0x11a   :  { %675 = vpow2.f32 %v564_v45  ;;  %v569_v30 = vmul.f32 -1.442695, %v178_v49  ;;  %v1063_v53 = vadd.f32 %v187_v22, %v185_v52  ;;  %v348_v38 = vmul.f32 %v332_v21, %v1019_v5  ;;  %v244_v5 = vld [vmem:[%s1123_s3 + $0x24] sm:$0x1] }
 0x11b   :  { %677 = vpow2.f32 %v566_v47  ;;  %v367_v46 = vmul.f32 %v351_v0, %v1021_v6  ;;  %v266_v52 = vmul.f32 0.5, %v258_v40  ;;  %v256_v6 = vld [vmem:[%s1123_s3 + $0x20] sm:$0x1] }
 0x11c   :  { %679 = vpow2.f32 %v568_v48  ;;  %v259_v48 = vld [vmem:[%s1123_s3 + $0x23] sm:$0x1] }
 0x11d   :  { %681 = vpow2.f32 %v569_v30 }
 0x121   :  { %v670_v54 = vpop.eup %669 }
 0x122   :  { %v672_v55 = vpop.eup %671  ;;  %v320_v56 = vadd.f32 1.0, %v670_v54  ;;  %v323_v31 = vmul.f32 -0.5, %v670_v54  ;;  %v326_v10 = vand.u32 2147483647, %v670_v54 }
 0x123   :  { %v674_v57 = vpop.eup %673  ;;  %v338_v58 = vadd.f32 1.0, %v672_v55  ;;  %v341_v3 = vmul.f32 -0.5, %v672_v55  ;;  %v344_v12 = vand.u32 2147483647, %v672_v55 }
 0x124   :  { %v676_v59 = vpop.eup %675  ;;  %683 = vlog2.f32 %v320_v56  ;;  %v357_v60 = vadd.f32 1.0, %v674_v57  ;;  %v360_v4 = vmul.f32 -0.5, %v674_v57  ;;  %v324_v8 = vadd.f32 1.0, %v323_v31  ;;  %v254_v56 = vld [vmem:[%s1123_s3 + $0x25] sm:$0x1] }
 0x125   :  { %v678_v61 = vpop.eup %677  ;;  %685 = vlog2.f32 %v338_v58  ;;  %v223_v62 = vadd.f32 1.0, %v676_v59  ;;  %v342_v11 = vadd.f32 1.0, %v341_v3  ;;  %v363_v15 = vand.u32 2147483647, %v674_v57 }
 0x126   :  { %v680_v51 = vpop.eup %679  ;;  %687 = vlog2.f32 %v357_v60  ;;  %v231_v63 = vadd.f32 1.0, %v678_v61  ;;  %v361_v13 = vadd.f32 1.0, %v360_v4  ;;  %v325_v19 = vmul.f32 %v670_v54, %v324_v8 }
 0x127   :  { %v239_v1 = vadd.f32 1.0, %v680_v51  ;;  %v682_v2 = vpop.eup %681  ;;  %689 = vrcp.f32 %v223_v62  ;;  %vm327_vm6 = vcmp.lt.f32.partialorder %v326_v10, 0.0004427343  ;;  %v343_v27 = vmul.f32 %v672_v55, %v342_v11  ;;  %v257_v62 = vld [vmem:[%s1123_s3 + $0x21] sm:$0x1] }
 0x128   :  { %691 = vrcp.f32 %v231_v63  ;;  %v249_v7 = vadd.f32 1.0, %v682_v2  ;;  %vm345_vm7 = vcmp.lt.f32.partialorder %v344_v12, 0.0004427343  ;;  %v362_v32 = vmul.f32 %v674_v57, %v361_v13  ;;  %v370_v57 = vld [vmem:[%s1123_s3 + $0x2a] sm:$0x1] }
 0x129   :  { %693 = vrcp.f32 %v239_v1  ;;  %vm364_vm8 = vcmp.lt.f32.partialorder %v363_v15, 0.0004427343  ;;  %v269_v60 = vmul.f32 0.5, %v259_v48  ;;  %v267_v63 = vsub.f32 %v256_v6, %v266_v52 }
 0x12a   :  { %695 = vrcp.f32 %v249_v7  ;;  %v268_v4 = vadd.f32 %v266_v52, %v256_v6 }
 0x12b   :  { %v270_v9 = vsub.f32 %v257_v62, %v269_v60  ;;  %v271_v10 = vadd.f32 %v269_v60, %v257_v62  ;;  %v458_v60 = vpop.xlane.xlu0 %457 }
 0x12e   :  { %v684_v14 = vpop.eup %683 }
 0x12f   :  { %v686_v16 = vpop.eup %685  ;;  %v322_v18 = vmul.f32 0.6931472, %v684_v14 }
 0x130   :  { %v688_v23 = vpop.eup %687  ;;  %v340_v26 = vmul.f32 0.6931472, %v686_v16  ;;  %v283_v16 = vsub.f32 %v268_v4, %v267_v63 }
 0x131   :  { %v328_v28 = vsel %vm327_vm6, %v325_v19, %v322_v18  ;;  %v359_v29 = vmul.f32 0.6931472, %v688_v23  ;;  %v690_v33 = vpop.eup %689 }
 0x132   :  { %v329_v34 = vadd.f32 %v328_v28, %v315_v17  ;;  %v346_v35 = vsel %vm345_vm7, %v343_v27, %v340_v26  ;;  %v692_v36 = vpop.eup %691  ;;  %v226_v54 = vmul.f32 2.0, %v690_v33  ;;  %v284_v17 = vsub.f32 %v271_v10, %v270_v9 }
 0x133   :  { %v347_v37 = vadd.f32 %v346_v35, %v333_v24  ;;  %v365_v39 = vsel %vm364_vm8, %v362_v32, %v359_v29  ;;  %v694_v41 = vpop.eup %693  ;;  %v234_v58 = vmul.f32 2.0, %v692_v36 }
 0x134   :  { %v331_v42 = vsub.f32 %v329_v34, %v330_v20  ;;  %v366_v43 = vadd.f32 %v365_v39, %v352_v25  ;;  %v696_v44 = vpop.eup %695  ;;  %v242_v47 = vmul.f32 2.0, %v694_v41  ;;  %v565_v2 = vadd.f32 -0.5, %v226_v54 }
 0x135   :  { %v349_v45 = vsub.f32 %v347_v37, %v348_v38  ;;  %v252_v49 = vmul.f32 2.0, %v696_v44  ;;  %v567_v7 = vadd.f32 -0.5, %v234_v58  ;;  %v287_v35 = vmul.f32 %v284_v17, %v283_v16 }
 0x136   :  { %v368_v30 = vsub.f32 %v366_v43, %v367_v46  ;;  %v243_v55 = vmul.f32 %v242_v47, %v242_v47 }
 0x137   :  { %v350_v22 = vadd.f32 %v349_v45, %v331_v42  ;;  %v253_v59 = vmul.f32 %v252_v49, %v252_v49  ;;  %v219_v45 = vld [vmem:[%s1123_s3 + $0x2c] sm:$0x1] }
 0x138   :  { %v245_v51 = vmul.f32 %v244_v5, %v243_v55  ;;  %vm304_vm10 = vcmp.gt.f32.partialorder %v219_v45, 0.0 }
 0x139   :  { %v369_v61 = vadd.f32 %v368_v30, %v350_v22  ;;  %v255_v31 = vmul.f32 %v254_v56, %v253_v59  ;;  %v379_v30 = vld [vmem:[%s1123_s3 + $0x2b] sm:$0x1]  ;;  %v307_v56 = vld [vmem:[%s1123_s3 + $0x29] sm:$0x1] }
 0x13a   :  { %v260_v3 = vmul.f32 0.5, %v245_v51  ;;  %v536_v51 = vpop.xlane.xlu0 %535 }
 0x13b   :  { %v371_v1 = vmul.f32 %v370_v57, %v369_v61  ;;  %v263_v8 = vmul.f32 0.5, %v255_v31  ;;  %v459_v61 = vsel %vm455_vm3, %v458_v60, 0.0  ;;  %v537_v62 = vsel %vm455_vm3, %v536_v51, 0.0 }
 0x13c   :  { %v261_v12 = vsub.f32 %v565_v2, %v260_v3  ;;  %v262_v13 = vadd.f32 %v565_v2, %v260_v3  ;;  %v538_v31 = vrot.slane %v537_v62, 4 }
 0x13d   :  { %v372_v11 = vsel %vm309_vm9, %v371_v1, 0.0  ;;  %v264_v14 = vsub.f32 %v567_v7, %v263_v8  ;;  %v265_v15 = vadd.f32 %v567_v7, %v263_v8 }
 0x13e   :  { %373 = vadd.xlane.f32.xlu0 %v372_v11  ;;  %v272_v18 = vmin.f32 %v262_v13, %v268_v4  ;;  %v273_v19 = vmax.f32 %v261_v12, %v267_v63  ;;  %v281_v20 = vsub.f32 %v262_v13, %v261_v12  ;;  %v292_v21 = vmax.f32 %v262_v13, %v268_v4 }
 0x13f   :  { %v276_v23 = vmin.f32 %v265_v15, %v271_v10  ;;  %v277_v24 = vmax.f32 %v264_v14, %v270_v9  ;;  %v282_v26 = vsub.f32 %v265_v15, %v264_v14  ;;  %v293_v27 = vmin.f32 %v261_v12, %v267_v63 }
 0x140   :  { %v274_v28 = vsub.f32 %v272_v18, %v273_v19  ;;  %v295_v29 = vmax.f32 %v265_v15, %v271_v10  ;;  %v296_v32 = vmin.f32 %v264_v14, %v270_v9  ;;  %v539_v1 = vadd.f32 %v538_v31, %v537_v62 }
 0x141   :  { %v278_v33 = vsub.f32 %v276_v23, %v277_v24  ;;  %v285_v34 = vmul.f32 %v282_v26, %v281_v20  ;;  %v294_v0 = vsub.f32 %v292_v21, %v293_v27  ;;  %v549_v15 = vand.u32 127, %v386_v50 }
 0x142   :  { %v275_v25 = vmax.f32 %v274_v28, 0.0  ;;  %v297_v36 = vsub.f32 %v295_v29, %v296_v32  ;;  %v540_v3 = vrot.slane %v539_v1, 2 }
 0x143   :  { %v279_v37 = vmax.f32 %v278_v33, 0.0  ;;  %v286_v38 = vadd.f32 1e-16, %v285_v34  ;;  %vm550_vm11 = vcmp.eq.s32.totalorder %v549_v15, 0  ;;  %vm552_vm12 = vcmp.eq.s32.totalorder %v549_v15, 1 }
 0x144   :  { %v298_v39 = vmul.f32 %v297_v36, %v294_v0  ;;  %v541_v7 = vadd.f32 %v540_v3, %v539_v1  ;;  %vm555_vm13 = vcmp.eq.s32.totalorder %v549_v15, 2 }
 0x145   :  { %v280_v40 = vmul.f32 %v279_v37, %v275_v25  ;;  %v288_v41 = vadd.f32 %v287_v35, %v286_v38 }
 0x146   :  { %v299_v42 = vadd.f32 1e-16, %v298_v39  ;;  %v542_v9 = vrot.slane %v541_v7, 1 }
 0x147   :  { %v289_v43 = vsub.f32 %v288_v41, %v280_v40 }
 0x148   :  { %697 = vrcp.f32 %v299_v42  ;;  %v543_v11 = vadd.f32 %v542_v9, %v541_v7 }
 0x149   :  { %699 = vrcp.f32 %v289_v43  ;;  %v300_v46 = vsub.f32 %v299_v42, %v289_v43 }
 0x14a   :  { %v544_v17 = vmul.f32 0.010416667, %v543_v11 }
 0x152   :  { %v698_v44 = vpop.eup %697 }
 0x153   :  { %v700_v47 = vpop.eup %699  ;;  %v302_v5 = vmul.f32 %v698_v44, %v300_v46 }
 0x154   :  { %v291_v48 = vmul.f32 %v700_v47, %v280_v40 }
 0x156   :  { %v303_v49 = vsub.f32 %v291_v48, %v302_v5 }
 0x158   :  { %v305_v52 = vsel %vm304_vm10, %v303_v49, 0.0 }
 0x159   :  { %v376_v22 = vmax.f32 %v305_v52, 0.0  ;;  %v306_v55 = vsub.f32 1.0, %v305_v52 }
 0x15b   :  { %v378_v54 = vmul.f32 %v376_v22, %v1063_v53  ;;  %v308_v58 = vmul.f32 %v307_v56, %v306_v55  ;;  %v460_v53 = vrot.slane %v459_v61, 4 }
 0x15d   :  { %v380_v6 = vmul.f32 %v379_v30, %v378_v54  ;;  %v310_v59 = vsel %vm309_vm9, %v308_v58, 0.0  ;;  %v461_v63 = vadd.f32 %v460_v53, %v459_v61 }
 0x15f   :  { %v381_v57 = vsel %vm309_vm9, %v380_v6, 0.0  ;;  %v462_v2 = vrot.slane %v461_v63, 2 }
 0x160   :  { %382 = vadd.xlane.f32.xlu1 %v381_v57 }
 0x161   :  { %v463_v4 = vadd.f32 %v462_v2, %v461_v63 }
 0x163   :  { %v464_v8 = vrot.slane %v463_v4, 1 }
 0x164   :  { %311 = vadd.xlane.f32.xlu1 %v310_v59 }
 0x165   :  { %v465_v10 = vadd.f32 %v464_v8, %v463_v4 }
 0x167   :  { %v466_v13 = vmul.f32 0.0026041667, %v465_v10 }
 0x1cb   :  { %v374_v16 = vpop.xlane.xlu0 %373 }
 0x1cc   :  { %v547_v20 = vmul.f32 0.58, %v374_v16 }
 0x1ce   :  { %v556_v28 = vsel %vm555_vm13, %v547_v20, 0.0 }
 0x1ed   :  { %v383_v12 = vpop.xlane.xlu1 %382 }
 0x1ee   :  { %v385_v14 = vsub.f32 0.0, %v383_v12 }
 0x1f0   :  { %v467_v18 = vadd.f32 %v466_v13, %v385_v14 }
 0x1f1   :  { %v312_v19 = vpop.xlane.xlu1 %311 }
 0x1f2   :  { %v545_v21 = vadd.f32 %v544_v17, %v467_v18  ;;  %v546_v23 = vmul.f32 0.05, %v312_v19 }
 0x1f4   :  { %v553_v24 = vsel %vm552_vm12, %v545_v21, 0.0  ;;  %v551_v26 = vsel %vm550_vm11, %v546_v23, 0.0 }
 0x1f5   :  { %v554_v27 = vadd.f32 %v553_v24, %v551_v26 }
 0x1f7   :  { %v557_v29 = vadd.f32 %v556_v28, %v554_v27 }
 0x1f9   :  { %558 = vst [vmem:[%s1124_s4] sm:$0x1] %v557_v29 }
 0x1fa   :  { %563 = vsyncpa [#allocation3], 1 }

</bundles_post_ra>
